<compile_context>
chip_gen: v7x
topology: tpu7x:2x2x1
jax: 0.10.0
libtpu: 0.0.40
codegen_flags: <defaults>
</compile_context>

<pallas_src>
import jax
import jax.numpy as jnp
from jax.experimental import pallas as pl
from jax.experimental.pallas import tpu as pltpu


def _round_up(a, b):
    return ((a + b - 1) // b) * b


# ----------------------------------------------------------------------------
# Blocks: Sequential(BlockType2, BlockType2, BlockType1, BlockType1, BlockType1)
# Collapsed to: ReLU, then 6x6 stride-1 max pool (separable), output (H-5, W-5).
# ----------------------------------------------------------------------------
def _vgg_blocks_kernel(x_ref, o_ref):
    # Single ReLU: ReLU is idempotent and max of non-negative data stays
    # non-negative, so one ReLU is equivalent to the original 13.
    x = jnp.maximum(x_ref[...], 0.0)  # (T, H, W)
    # Five MaxPool2d(2,1) compose to a 6x6 stride-1 max; do it separably.
    for _ in range(5):                        # along W (lanes)
        x = jnp.maximum(x[:, :, :-1], x[:, :, 1:])
    for _ in range(5):                        # along H (sublanes)
        x = jnp.maximum(x[:, :-1, :], x[:, 1:, :])
    o_ref[...] = x


def vgg_blocks(x, *, tile=8):
    """x: (N, C, H, W) float32 -> (N, C, H-5, W-5)"""
    N, C, H, W = x.shape
    NC = N * C
    NCp = _round_up(NC, tile)
    xr = x.reshape(NC, H, W)
    if NCp != NC:
        xr = jnp.zeros((NCp, H, W), x.dtype).at[:NC].set(xr)

    out = pl.pallas_call(
        _vgg_blocks_kernel,
        out_shape=jax.ShapeDtypeStruct((NCp, H - 5, W - 5), x.dtype),
        grid_spec=pltpu.PrefetchScalarGridSpec(
            num_scalar_prefetch=0,
            grid=(NCp // tile,),
            in_specs=[pl.BlockSpec((tile, H, W), lambda i: (i, 0, 0))],
            out_specs=pl.BlockSpec((tile, H - 5, W - 5), lambda i: (i, 0, 0)),
        ),
        compiler_params=pltpu.CompilerParams(
            dimension_semantics=("parallel",)),
    )(xr)
    return out[:NC].reshape(N, C, H - 5, W - 5)


# ----------------------------------------------------------------------------
# Linear: y = x @ W.T + b  (PyTorch nn.Linear semantics).
# Batch (M) is tiny -> effectively a GEMV; grid runs only over K, the whole
# (Mp, Np) output + bias stay resident in VMEM, weights stream once from HBM.
# ----------------------------------------------------------------------------
def _linear_kernel(x_ref, w_ref, b_ref, o_ref, acc_ref):
    k = pl.program_id(0)

    @pl.when(k == 0)
    def _():
        acc_ref[...] = jnp.zeros_like(acc_ref)

    acc_ref[...] += jnp.dot(x_ref[...], w_ref[...],
                            preferred_element_type=jnp.float32)

    @pl.when(k == pl.num_programs(0) - 1)
    def _():
        o_ref[...] = (acc_ref[...] + b_ref[...]).astype(o_ref.dtype)


def prepare_linear_params(w, b, *, tk_max=1024):
    """Pre-transpose and pad once (hoisted out of the forward pass).

    w: (N_out, K), b: (N_out,) -> (wp (Kp, Np), bp (1, Np), N_out, tk)
    """
    n_out, k_in = w.shape
    tk = min(tk_max, _round_up(k_in, 128))
    kp = _round_up(k_in, tk)
    np_ = _round_up(n_out, 128)
    wp = jnp.zeros((kp, np_), w.dtype).at[:k_in, :n_out].set(w.T)
    bp = jnp.zeros((1, np_), b.dtype).at[0, :n_out].set(b)
    return wp, bp, n_out, tk


def linear(x, wp, bp, n_out, tk):
    """x: (M, K) with padded weights wp: (Kp, Np), bias bp: (1, Np)."""
    M, K = x.shape
    Kp, Np = wp.shape
    Mp = max(8, _round_up(M, 8))
    xp = jnp.zeros((Mp, Kp), x.dtype).at[:M, :K].set(x)

    out = pl.pallas_call(
        _linear_kernel,
        out_shape=jax.ShapeDtypeStruct((Mp, Np), x.dtype),
        grid_spec=pltpu.PrefetchScalarGridSpec(
            num_scalar_prefetch=0,
            grid=(Kp // tk,),
            in_specs=[
                pl.BlockSpec((Mp, tk), lambda k: (0, k)),   # activations
                pl.BlockSpec((tk, Np), lambda k: (k, 0)),   # weight slab
                pl.BlockSpec((1, Np), lambda k: (0, 0)),    # bias, resident
            ],
            out_specs=pl.BlockSpec((Mp, Np), lambda k: (0, 0)),  # resident
            scratch_shapes=[pltpu.VMEM((Mp, Np), jnp.float32)],
        ),
        compiler_params=pltpu.CompilerParams(
            dimension_semantics=("arbitrary",),
            vmem_limit_bytes=48 * 1024 * 1024,  # fits 2x double-buffered 16 MiB
        ),                                      # weight slabs; < v7x 64 MiB
    )(xp, wp, bp)
    return out[:M, :n_out]


# ----------------------------------------------------------------------------
# Full forward
# ----------------------------------------------------------------------------
def make_vgg_forward(params):
    fc1_w, fc1_b, fc2_w, fc2_b, op_w, op_b = params
    # Hoisted weight transpose/pad: done once here, not per forward call.
    fc1 = prepare_linear_params(fc1_w, fc1_b)
    fc2 = prepare_linear_params(fc2_w, fc2_b)
    op = prepare_linear_params(op_w, op_b)

    def forward(img):
        assert img.ndim == 4 and img.shape[1] == 3, \
            "Expected image of size [N,3,H,W]"
        x = vgg_blocks(img)                  # (N, 3, H-5, W-5)
        x = x.reshape(img.shape[0], -1)      # nn.Flatten
        x = linear(x, *fc1)                  # fc1
        x = linear(x, *fc2)                  # fc2
        x = linear(x, *op)                   # op
        return x

    return forward


if __name__ == "__main__":
    key = jax.random.PRNGKey(0)
    # Small shapes consistent with the module (C must be 3; the module derives
    # flat_size from a dummy forward through the blocks — we use the same rule).
    N, C, H, W = 2, 3, 16, 16
    HID, OUT = 512, 128
    k_img, k1, k2, k3, k4, k5, k6 = jax.random.split(key, 7)
    img = jax.random.normal(k_img, (N, C, H, W), jnp.float32)

    flat_size = C * (H - 5) * (W - 5)   # blocks shrink spatial dims by 5

    fc1_w = jax.random.normal(k1, (HID, flat_size), jnp.float32) * 0.01
    fc1_b = jax.random.normal(k2, (HID,), jnp.float32) * 0.01
    fc2_w = jax.random.normal(k3, (HID, HID), jnp.float32) * 0.01
    fc2_b = jax.random.normal(k4, (HID,), jnp.float32) * 0.01
    op_w = jax.random.normal(k5, (OUT, HID), jnp.float32) * 0.01
    op_b = jax.random.normal(k6, (OUT,), jnp.float32) * 0.01

    forward = jax.jit(make_vgg_forward((fc1_w, fc1_b, fc2_w, fc2_b, op_w, op_b)))
    out = forward(img)
    jax.block_until_ready(out)
    assert out.shape == (N, OUT) and out.dtype == jnp.float32
    print("KERNEL_OK")
</pallas_src>

<mosaic_0001>
module attributes {stable_mosaic.version = 11 : i64} {
  func.func @_vgg_blocks_kernel(%arg0: i32, %arg1: memref<8x16x16xf32, #tpu.memory_space<vmem>>, %arg2: memref<8x11x11xf32, #tpu.memory_space<vmem>>) attributes {dimension_semantics = [#tpu.dimension_semantics<parallel>], iteration_bounds = array<i64: 1>, scalar_prefetch = 0 : i64, scratch_operands = 0 : i64, tpu.core_type = #tpu.core_type<tc>, window_params = [{transform_indices = @transform_0, window_bounds = array<i64: 8, 16, 16>}, {transform_indices = @transform_1, window_bounds = array<i64: 8, 11, 11>}]} {
    %c0 = arith.constant 0 : index
    %c0_0 = arith.constant 0 : index
    %c0_1 = arith.constant 0 : index
    %0 = vector.load %arg1[%c0, %c0_0, %c0_1] : memref<8x16x16xf32, #tpu.memory_space<vmem>>, vector<8x16x16xf32>
    %cst = arith.constant 0.000000e+00 : f32
    %1 = vector.broadcast %cst : f32 to vector<8x16x16xf32>
    %2 = arith.maximumf %0, %1 : vector<8x16x16xf32>
    %3 = vector.extract_strided_slice %2 {offsets = [0, 0, 0], sizes = [8, 16, 15], strides = [1, 1, 1]} : vector<8x16x16xf32> to vector<8x16x15xf32>
    %4 = vector.extract_strided_slice %2 {offsets = [0, 0, 1], sizes = [8, 16, 15], strides = [1, 1, 1]} : vector<8x16x16xf32> to vector<8x16x15xf32>
    %5 = arith.maximumf %3, %4 : vector<8x16x15xf32>
    %6 = vector.extract_strided_slice %5 {offsets = [0, 0, 0], sizes = [8, 16, 14], strides = [1, 1, 1]} : vector<8x16x15xf32> to vector<8x16x14xf32>
    %7 = vector.extract_strided_slice %5 {offsets = [0, 0, 1], sizes = [8, 16, 14], strides = [1, 1, 1]} : vector<8x16x15xf32> to vector<8x16x14xf32>
    %8 = arith.maximumf %6, %7 : vector<8x16x14xf32>
    %9 = vector.extract_strided_slice %8 {offsets = [0, 0, 0], sizes = [8, 16, 13], strides = [1, 1, 1]} : vector<8x16x14xf32> to vector<8x16x13xf32>
    %10 = vector.extract_strided_slice %8 {offsets = [0, 0, 1], sizes = [8, 16, 13], strides = [1, 1, 1]} : vector<8x16x14xf32> to vector<8x16x13xf32>
    %11 = arith.maximumf %9, %10 : vector<8x16x13xf32>
    %12 = vector.extract_strided_slice %11 {offsets = [0, 0, 0], sizes = [8, 16, 12], strides = [1, 1, 1]} : vector<8x16x13xf32> to vector<8x16x12xf32>
    %13 = vector.extract_strided_slice %11 {offsets = [0, 0, 1], sizes = [8, 16, 12], strides = [1, 1, 1]} : vector<8x16x13xf32> to vector<8x16x12xf32>
    %14 = arith.maximumf %12, %13 : vector<8x16x12xf32>
    %15 = vector.extract_strided_slice %14 {offsets = [0, 0, 0], sizes = [8, 16, 11], strides = [1, 1, 1]} : vector<8x16x12xf32> to vector<8x16x11xf32>
    %16 = vector.extract_strided_slice %14 {offsets = [0, 0, 1], sizes = [8, 16, 11], strides = [1, 1, 1]} : vector<8x16x12xf32> to vector<8x16x11xf32>
    %17 = arith.maximumf %15, %16 : vector<8x16x11xf32>
    %18 = vector.extract_strided_slice %17 {offsets = [0, 0, 0], sizes = [8, 15, 11], strides = [1, 1, 1]} : vector<8x16x11xf32> to vector<8x15x11xf32>
    %19 = vector.extract_strided_slice %17 {offsets = [0, 1, 0], sizes = [8, 15, 11], strides = [1, 1, 1]} : vector<8x16x11xf32> to vector<8x15x11xf32>
    %20 = arith.maximumf %18, %19 : vector<8x15x11xf32>
    %21 = vector.extract_strided_slice %20 {offsets = [0, 0, 0], sizes = [8, 14, 11], strides = [1, 1, 1]} : vector<8x15x11xf32> to vector<8x14x11xf32>
    %22 = vector.extract_strided_slice %20 {offsets = [0, 1, 0], sizes = [8, 14, 11], strides = [1, 1, 1]} : vector<8x15x11xf32> to vector<8x14x11xf32>
    %23 = arith.maximumf %21, %22 : vector<8x14x11xf32>
    %24 = vector.extract_strided_slice %23 {offsets = [0, 0, 0], sizes = [8, 13, 11], strides = [1, 1, 1]} : vector<8x14x11xf32> to vector<8x13x11xf32>
    %25 = vector.extract_strided_slice %23 {offsets = [0, 1, 0], sizes = [8, 13, 11], strides = [1, 1, 1]} : vector<8x14x11xf32> to vector<8x13x11xf32>
    %26 = arith.maximumf %24, %25 : vector<8x13x11xf32>
    %27 = vector.extract_strided_slice %26 {offsets = [0, 0, 0], sizes = [8, 12, 11], strides = [1, 1, 1]} : vector<8x13x11xf32> to vector<8x12x11xf32>
    %28 = vector.extract_strided_slice %26 {offsets = [0, 1, 0], sizes = [8, 12, 11], strides = [1, 1, 1]} : vector<8x13x11xf32> to vector<8x12x11xf32>
    %29 = arith.maximumf %27, %28 : vector<8x12x11xf32>
    %30 = vector.extract_strided_slice %29 {offsets = [0, 0, 0], sizes = [8, 11, 11], strides = [1, 1, 1]} : vector<8x12x11xf32> to vector<8x11x11xf32>
    %31 = vector.extract_strided_slice %29 {offsets = [0, 1, 0], sizes = [8, 11, 11], strides = [1, 1, 1]} : vector<8x12x11xf32> to vector<8x11x11xf32>
    %32 = arith.maximumf %30, %31 : vector<8x11x11xf32>
    %c0_2 = arith.constant 0 : index
    %c0_3 = arith.constant 0 : index
    %c0_4 = arith.constant 0 : index
    %33 = vector.load %arg2[%c0_2, %c0_3, %c0_4] : memref<8x11x11xf32, #tpu.memory_space<vmem>>, vector<8x11x11xf32>
    tpu.vector_store %arg2[%c0_2, %c0_3, %c0_4], %32 {strides = array<i32>} : memref<8x11x11xf32, #tpu.memory_space<vmem>>, vector<8x11x11xf32>,
    return
  }
  func.func @transform_0(%arg0: i32) -> (i32, i32, i32) {
    %c0_i32 = arith.constant 0 : i32
    %c0_i32_0 = arith.constant 0 : i32
    %c0_i32_1 = arith.constant 0 : i32
    return %arg0, %c0_i32, %c0_i32_0 : i32, i32, i32
  }
  func.func @transform_1(%arg0: i32) -> (i32, i32, i32) {
    %c0_i32 = arith.constant 0 : i32
    %c0_i32_0 = arith.constant 0 : i32
    %c0_i32_1 = arith.constant 0 : i32
    return %arg0, %c0_i32, %c0_i32_0 : i32, i32, i32
  }
}

module attributes {stable_mosaic.version = 11 : i64} {
  func.func @_linear_kernel(%arg0: i32, %arg1: memref<8x384xf32, #tpu.memory_space<vmem>>, %arg2: memref<384x512xf32, #tpu.memory_space<vmem>>, %arg3: memref<1x512xf32, #tpu.memory_space<vmem>>, %arg4: memref<8x512xf32, #tpu.memory_space<vmem>>, %arg5: memref<8x512xf32, #tpu.memory_space<vmem>>) attributes {dimension_semantics = [#tpu.dimension_semantics<arbitrary>], iteration_bounds = array<i64: 1>, scalar_prefetch = 0 : i64, scratch_operands = 1 : i64, tpu.core_type = #tpu.core_type<tc>, window_params = [{transform_indices = @transform_0, window_bounds = array<i64: 8, 384>}, {transform_indices = @transform_1, window_bounds = array<i64: 384, 512>}, {pipeline_mode = #tpu.pipeline_mode<synchronous>, transform_indices = @transform_2, window_bounds = array<i64: 1, 512>}, {pipeline_mode = #tpu.pipeline_mode<synchronous>, transform_indices = @transform_3, window_bounds = array<i64: 8, 512>}]} {
    %c0_i32 = arith.constant 0 : i32
    %0 = arith.cmpi eq, %arg0, %c0_i32 : i32
    %1 = arith.extui %0 : i1 to i32
    %c0_i32_0 = arith.constant 0 : i32
    %2 = arith.cmpi ne, %1, %c0_i32_0 : i32
    scf.if %2 {
      %cst_10 = arith.constant 0.000000e+00 : f32
      %12 = vector.broadcast %cst_10 : f32 to vector<8x512xf32>
      %c0_11 = arith.constant 0 : index
      %c0_12 = arith.constant 0 : index
      %13 = vector.load %arg5[%c0_11, %c0_12] : memref<8x512xf32, #tpu.memory_space<vmem>>, vector<8x512xf32>
      tpu.vector_store %arg5[%c0_11, %c0_12], %12 {strides = array<i32>} : memref<8x512xf32, #tpu.memory_space<vmem>>, vector<8x512xf32>,
    } else {
    }
    %c0 = arith.constant 0 : index
    %c0_1 = arith.constant 0 : index
    %3 = vector.load %arg5[%c0, %c0_1] : memref<8x512xf32, #tpu.memory_space<vmem>>, vector<8x512xf32>
    %c0_2 = arith.constant 0 : index
    %c0_3 = arith.constant 0 : index
    %4 = vector.load %arg1[%c0_2, %c0_3] : memref<8x384xf32, #tpu.memory_space<vmem>>, vector<8x384xf32>
    %c0_4 = arith.constant 0 : index
    %c0_5 = arith.constant 0 : index
    %5 = vector.load %arg2[%c0_4, %c0_5] : memref<384x512xf32, #tpu.memory_space<vmem>>, vector<384x512xf32>
    %cst = arith.constant dense<0.000000e+00> : vector<8x512xf32>
    %6 = tpu.matmul %4, %5, %cst {dimension_numbers = #tpu.dot_dimension_numbers<[1], [0], [0], [1], [0, 0, 1, 1], [], []>} : vector<8x384xf32>, vector<384x512xf32>, vector<8x512xf32> -> vector<8x512xf32>
    %7 = arith.addf %3, %6 : vector<8x512xf32>
    %c0_6 = arith.constant 0 : index
    %c0_7 = arith.constant 0 : index
    %8 = vector.load %arg5[%c0_6, %c0_7] : memref<8x512xf32, #tpu.memory_space<vmem>>, vector<8x512xf32>
    tpu.vector_store %arg5[%c0_6, %c0_7], %7 {strides = array<i32>} : memref<8x512xf32, #tpu.memory_space<vmem>>, vector<8x512xf32>,
    %c0_i32_8 = arith.constant 0 : i32
    %9 = arith.cmpi eq, %arg0, %c0_i32_8 : i32
    %10 = arith.extui %9 : i1 to i32
    %c0_i32_9 = arith.constant 0 : i32
    %11 = arith.cmpi ne, %10, %c0_i32_9 : i32
    scf.if %11 {
      %c0_10 = arith.constant 0 : index
      %c0_11 = arith.constant 0 : index
      %12 = vector.load %arg5[%c0_10, %c0_11] : memref<8x512xf32, #tpu.memory_space<vmem>>, vector<8x512xf32>
      %c0_12 = arith.constant 0 : index
      %c0_13 = arith.constant 0 : index
      %13 = vector.load %arg3[%c0_12, %c0_13] : memref<1x512xf32, #tpu.memory_space<vmem>>, vector<1x512xf32>
      %14 = vector.broadcast %13 : vector<1x512xf32> to vector<8x512xf32>
      %15 = arith.addf %12, %14 : vector<8x512xf32>
      %c0_14 = arith.constant 0 : index
      %c0_15 = arith.constant 0 : index
      %16 = vector.load %arg4[%c0_14, %c0_15] : memref<8x512xf32, #tpu.memory_space<vmem>>, vector<8x512xf32>
      tpu.vector_store %arg4[%c0_14, %c0_15], %15 {strides = array<i32>} : memref<8x512xf32, #tpu.memory_space<vmem>>, vector<8x512xf32>,
    } else {
    }
    return
  }
  func.func @transform_0(%arg0: i32) -> (i32, i32) {
    %c0_i32 = arith.constant 0 : i32
    %c0_i32_0 = arith.constant 0 : i32
    return %c0_i32, %arg0 : i32, i32
  }
  func.func @transform_1(%arg0: i32) -> (i32, i32) {
    %c0_i32 = arith.constant 0 : i32
    %c0_i32_0 = arith.constant 0 : i32
    return %arg0, %c0_i32 : i32, i32
  }
  func.func @transform_2(%arg0: i32) -> (i32, i32) {
    %c0_i32 = arith.constant 0 : i32
    %c0_i32_0 = arith.constant 0 : i32
    %c0_i32_1 = arith.constant 0 : i32
    return %c0_i32, %c0_i32_0 : i32, i32
  }
  func.func @transform_3(%arg0: i32) -> (i32, i32) {
    %c0_i32 = arith.constant 0 : i32
    %c0_i32_0 = arith.constant 0 : i32
    %c0_i32_1 = arith.constant 0 : i32
    return %c0_i32, %c0_i32_0 : i32, i32
  }
}

module attributes {stable_mosaic.version = 11 : i64} {
  func.func @_linear_kernel(%arg0: i32, %arg1: memref<8x512xf32, #tpu.memory_space<vmem>>, %arg2: memref<512x512xf32, #tpu.memory_space<vmem>>, %arg3: memref<1x512xf32, #tpu.memory_space<vmem>>, %arg4: memref<8x512xf32, #tpu.memory_space<vmem>>, %arg5: memref<8x512xf32, #tpu.memory_space<vmem>>) attributes {dimension_semantics = [#tpu.dimension_semantics<arbitrary>], iteration_bounds = array<i64: 1>, scalar_prefetch = 0 : i64, scratch_operands = 1 : i64, tpu.core_type = #tpu.core_type<tc>, window_params = [{transform_indices = @transform_0, window_bounds = array<i64: 8, 512>}, {transform_indices = @transform_1, window_bounds = array<i64: 512, 512>}, {pipeline_mode = #tpu.pipeline_mode<synchronous>, transform_indices = @transform_2, window_bounds = array<i64: 1, 512>}, {pipeline_mode = #tpu.pipeline_mode<synchronous>, transform_indices = @transform_3, window_bounds = array<i64: 8, 512>}]} {
    %c0_i32 = arith.constant 0 : i32
    %0 = arith.cmpi eq, %arg0, %c0_i32 : i32
    %1 = arith.extui %0 : i1 to i32
    %c0_i32_0 = arith.constant 0 : i32
    %2 = arith.cmpi ne, %1, %c0_i32_0 : i32
    scf.if %2 {
      %cst_10 = arith.constant 0.000000e+00 : f32
      %12 = vector.broadcast %cst_10 : f32 to vector<8x512xf32>
      %c0_11 = arith.constant 0 : index
      %c0_12 = arith.constant 0 : index
      %13 = vector.load %arg5[%c0_11, %c0_12] : memref<8x512xf32, #tpu.memory_space<vmem>>, vector<8x512xf32>
      tpu.vector_store %arg5[%c0_11, %c0_12], %12 {strides = array<i32>} : memref<8x512xf32, #tpu.memory_space<vmem>>, vector<8x512xf32>,
    } else {
    }
    %c0 = arith.constant 0 : index
    %c0_1 = arith.constant 0 : index
    %3 = vector.load %arg5[%c0, %c0_1] : memref<8x512xf32, #tpu.memory_space<vmem>>, vector<8x512xf32>
    %c0_2 = arith.constant 0 : index
    %c0_3 = arith.constant 0 : index
    %4 = vector.load %arg1[%c0_2, %c0_3] : memref<8x512xf32, #tpu.memory_space<vmem>>, vector<8x512xf32>
    %c0_4 = arith.constant 0 : index
    %c0_5 = arith.constant 0 : index
    %5 = vector.load %arg2[%c0_4, %c0_5] : memref<512x512xf32, #tpu.memory_space<vmem>>, vector<512x512xf32>
    %cst = arith.constant dense<0.000000e+00> : vector<8x512xf32>
    %6 = tpu.matmul %4, %5, %cst {dimension_numbers = #tpu.dot_dimension_numbers<[1], [0], [0], [1], [0, 0, 1, 1], [], []>} : vector<8x512xf32>, vector<512x512xf32>, vector<8x512xf32> -> vector<8x512xf32>
    %7 = arith.addf %3, %6 : vector<8x512xf32>
    %c0_6 = arith.constant 0 : index
    %c0_7 = arith.constant 0 : index
    %8 = vector.load %arg5[%c0_6, %c0_7] : memref<8x512xf32, #tpu.memory_space<vmem>>, vector<8x512xf32>
    tpu.vector_store %arg5[%c0_6, %c0_7], %7 {strides = array<i32>} : memref<8x512xf32, #tpu.memory_space<vmem>>, vector<8x512xf32>,
    %c0_i32_8 = arith.constant 0 : i32
    %9 = arith.cmpi eq, %arg0, %c0_i32_8 : i32
    %10 = arith.extui %9 : i1 to i32
    %c0_i32_9 = arith.constant 0 : i32
    %11 = arith.cmpi ne, %10, %c0_i32_9 : i32
    scf.if %11 {
      %c0_10 = arith.constant 0 : index
      %c0_11 = arith.constant 0 : index
      %12 = vector.load %arg5[%c0_10, %c0_11] : memref<8x512xf32, #tpu.memory_space<vmem>>, vector<8x512xf32>
      %c0_12 = arith.constant 0 : index
      %c0_13 = arith.constant 0 : index
      %13 = vector.load %arg3[%c0_12, %c0_13] : memref<1x512xf32, #tpu.memory_space<vmem>>, vector<1x512xf32>
      %14 = vector.broadcast %13 : vector<1x512xf32> to vector<8x512xf32>
      %15 = arith.addf %12, %14 : vector<8x512xf32>
      %c0_14 = arith.constant 0 : index
      %c0_15 = arith.constant 0 : index
      %16 = vector.load %arg4[%c0_14, %c0_15] : memref<8x512xf32, #tpu.memory_space<vmem>>, vector<8x512xf32>
      tpu.vector_store %arg4[%c0_14, %c0_15], %15 {strides = array<i32>} : memref<8x512xf32, #tpu.memory_space<vmem>>, vector<8x512xf32>,
    } else {
    }
    return
  }
  func.func @transform_0(%arg0: i32) -> (i32, i32) {
    %c0_i32 = arith.constant 0 : i32
    %c0_i32_0 = arith.constant 0 : i32
    return %c0_i32, %arg0 : i32, i32
  }
  func.func @transform_1(%arg0: i32) -> (i32, i32) {
    %c0_i32 = arith.constant 0 : i32
    %c0_i32_0 = arith.constant 0 : i32
    return %arg0, %c0_i32 : i32, i32
  }
  func.func @transform_2(%arg0: i32) -> (i32, i32) {
    %c0_i32 = arith.constant 0 : i32
    %c0_i32_0 = arith.constant 0 : i32
    %c0_i32_1 = arith.constant 0 : i32
    return %c0_i32, %c0_i32_0 : i32, i32
  }
  func.func @transform_3(%arg0: i32) -> (i32, i32) {
    %c0_i32 = arith.constant 0 : i32
    %c0_i32_0 = arith.constant 0 : i32
    %c0_i32_1 = arith.constant 0 : i32
    return %c0_i32, %c0_i32_0 : i32, i32
  }
}

module attributes {stable_mosaic.version = 11 : i64} {
  func.func @_linear_kernel(%arg0: i32, %arg1: memref<8x512xf32, #tpu.memory_space<vmem>>, %arg2: memref<512x128xf32, #tpu.memory_space<vmem>>, %arg3: memref<1x128xf32, #tpu.memory_space<vmem>>, %arg4: memref<8x128xf32, #tpu.memory_space<vmem>>, %arg5: memref<8x128xf32, #tpu.memory_space<vmem>>) attributes {dimension_semantics = [#tpu.dimension_semantics<arbitrary>], iteration_bounds = array<i64: 1>, scalar_prefetch = 0 : i64, scratch_operands = 1 : i64, tpu.core_type = #tpu.core_type<tc>, window_params = [{transform_indices = @transform_0, window_bounds = array<i64: 8, 512>}, {transform_indices = @transform_1, window_bounds = array<i64: 512, 128>}, {pipeline_mode = #tpu.pipeline_mode<synchronous>, transform_indices = @transform_2, window_bounds = array<i64: 1, 128>}, {pipeline_mode = #tpu.pipeline_mode<synchronous>, transform_indices = @transform_3, window_bounds = array<i64: 8, 128>}]} {
    %c0_i32 = arith.constant 0 : i32
    %0 = arith.cmpi eq, %arg0, %c0_i32 : i32
    %1 = arith.extui %0 : i1 to i32
    %c0_i32_0 = arith.constant 0 : i32
    %2 = arith.cmpi ne, %1, %c0_i32_0 : i32
    scf.if %2 {
      %cst_10 = arith.constant 0.000000e+00 : f32
      %12 = vector.broadcast %cst_10 : f32 to vector<8x128xf32>
      %c0_11 = arith.constant 0 : index
      %c0_12 = arith.constant 0 : index
      %13 = vector.load %arg5[%c0_11, %c0_12] : memref<8x128xf32, #tpu.memory_space<vmem>>, vector<8x128xf32>
      tpu.vector_store %arg5[%c0_11, %c0_12], %12 {strides = array<i32>} : memref<8x128xf32, #tpu.memory_space<vmem>>, vector<8x128xf32>,
    } else {
    }
    %c0 = arith.constant 0 : index
    %c0_1 = arith.constant 0 : index
    %3 = vector.load %arg5[%c0, %c0_1] : memref<8x128xf32, #tpu.memory_space<vmem>>, vector<8x128xf32>
    %c0_2 = arith.constant 0 : index
    %c0_3 = arith.constant 0 : index
    %4 = vector.load %arg1[%c0_2, %c0_3] : memref<8x512xf32, #tpu.memory_space<vmem>>, vector<8x512xf32>
    %c0_4 = arith.constant 0 : index
    %c0_5 = arith.constant 0 : index
    %5 = vector.load %arg2[%c0_4, %c0_5] : memref<512x128xf32, #tpu.memory_space<vmem>>, vector<512x128xf32>
    %cst = arith.constant dense<0.000000e+00> : vector<8x128xf32>
    %6 = tpu.matmul %4, %5, %cst {dimension_numbers = #tpu.dot_dimension_numbers<[1], [0], [0], [1], [0, 0, 1, 1], [], []>} : vector<8x512xf32>, vector<512x128xf32>, vector<8x128xf32> -> vector<8x128xf32>
    %7 = arith.addf %3, %6 : vector<8x128xf32>
    %c0_6 = arith.constant 0 : index
    %c0_7 = arith.constant 0 : index
    %8 = vector.load %arg5[%c0_6, %c0_7] : memref<8x128xf32, #tpu.memory_space<vmem>>, vector<8x128xf32>
    tpu.vector_store %arg5[%c0_6, %c0_7], %7 {strides = array<i32>} : memref<8x128xf32, #tpu.memory_space<vmem>>, vector<8x128xf32>,
    %c0_i32_8 = arith.constant 0 : i32
    %9 = arith.cmpi eq, %arg0, %c0_i32_8 : i32
    %10 = arith.extui %9 : i1 to i32
    %c0_i32_9 = arith.constant 0 : i32
    %11 = arith.cmpi ne, %10, %c0_i32_9 : i32
    scf.if %11 {
      %c0_10 = arith.constant 0 : index
      %c0_11 = arith.constant 0 : index
      %12 = vector.load %arg5[%c0_10, %c0_11] : memref<8x128xf32, #tpu.memory_space<vmem>>, vector<8x128xf32>
      %c0_12 = arith.constant 0 : index
      %c0_13 = arith.constant 0 : index
      %13 = vector.load %arg3[%c0_12, %c0_13] : memref<1x128xf32, #tpu.memory_space<vmem>>, vector<1x128xf32>
      %14 = vector.broadcast %13 : vector<1x128xf32> to vector<8x128xf32>
      %15 = arith.addf %12, %14 : vector<8x128xf32>
      %c0_14 = arith.constant 0 : index
      %c0_15 = arith.constant 0 : index
      %16 = vector.load %arg4[%c0_14, %c0_15] : memref<8x128xf32, #tpu.memory_space<vmem>>, vector<8x128xf32>
      tpu.vector_store %arg4[%c0_14, %c0_15], %15 {strides = array<i32>} : memref<8x128xf32, #tpu.memory_space<vmem>>, vector<8x128xf32>,
    } else {
    }
    return
  }
  func.func @transform_0(%arg0: i32) -> (i32, i32) {
    %c0_i32 = arith.constant 0 : i32
    %c0_i32_0 = arith.constant 0 : i32
    return %c0_i32, %arg0 : i32, i32
  }
  func.func @transform_1(%arg0: i32) -> (i32, i32) {
    %c0_i32 = arith.constant 0 : i32
    %c0_i32_0 = arith.constant 0 : i32
    return %arg0, %c0_i32 : i32, i32
  }
  func.func @transform_2(%arg0: i32) -> (i32, i32) {
    %c0_i32 = arith.constant 0 : i32
    %c0_i32_0 = arith.constant 0 : i32
    %c0_i32_1 = arith.constant 0 : i32
    return %c0_i32, %c0_i32_0 : i32, i32
  }
  func.func @transform_3(%arg0: i32) -> (i32, i32) {
    %c0_i32 = arith.constant 0 : i32
    %c0_i32_0 = arith.constant 0 : i32
    %c0_i32_1 = arith.constant 0 : i32
    return %c0_i32, %c0_i32_0 : i32, i32
  }
}

</mosaic_0001>

<bundles_post_ra>
// kernel: forward.4
= control target key start
LH: loop header
LB: loop body
LE: loop exit
PB: predicated region body
PF: predicated region fallthrough
CT: control target
= control target key end

     0   :  { %s824_s14 = smov 127   ;;  %vm456_vm0 = vcmask 1046528   ;;  %vm803_vm1 = vcmask 83968   ;;  %vm801_vm2 = vcmask 89088   ;;  %s1107_s0 = inlined_call_operand.vmem [shape: f32[8,16,16], index: 0, kind: input, shape index: {}]   ;;  %s1108_s1 = inlined_call_operand.vmem [shape: f32[8,11,11], index: 1, kind: output, shape index: {}]  }
   0x1   :  { %v8_v0 = vld [vmem:[%s1107_s0] sm:$0xff]  ;;  %v10_v1 = vld [vmem:[%s1107_s0 + $0x10] sm:$0xff]  ;;  %v9_v2 = vld [vmem:[%s1107_s0 + $0x8] sm:$0xff] }
   0x2   :  { %v24_v3 = vmax.f32 %v8_v0, 0.0  ;;  %v26_v4 = vmax.f32 %v10_v1, 0.0  ;;  %v11_v5 = vld [vmem:[%s1107_s0 + $0x18] sm:$0xff]  ;;  %v25_v6 = vmax.f32 %v9_v2, 0.0  ;;  %v12_v8 = vld [vmem:[%s1107_s0 + $0x20] sm:$0xff]  ;;  %v13_v9 = vld [vmem:[%s1107_s0 + $0x28] sm:$0xff] }
   0x3   :  { %v27_v7 = vmax.f32 %v11_v5, 0.0  ;;  %v28_v10 = vmax.f32 %v12_v8, 0.0  ;;  %v29_v11 = vmax.f32 %v13_v9, 0.0  ;;  %v14_v12 = vld [vmem:[%s1107_s0 + $0x30] sm:$0xff]  ;;  %v15_v13 = vld [vmem:[%s1107_s0 + $0x38] sm:$0xff]  ;;  %v16_v16 = vld [vmem:[%s1107_s0 + $0x40] sm:$0xff] }
   0x4   :  { %56 = vrot.lane.b32.xlu0 %v24_v3, %s824_s14  ;;  %60 = vrot.lane.b32.xlu1 %v26_v4, %s824_s14  ;;  %v30_v14 = vmax.f32 %v14_v12, 0.0  ;;  %v31_v15 = vmax.f32 %v15_v13, 0.0  ;;  %v17_v17 = vld [vmem:[%s1107_s0 + $0x48] sm:$0xff]  ;;  %v32_v18 = vmax.f32 %v16_v16, 0.0  ;;  %v18_v20 = vld [vmem:[%s1107_s0 + $0x50] sm:$0xff] }
   0x5   :  { %v33_v19 = vmax.f32 %v17_v17, 0.0  ;;  %v19_v21 = vld [vmem:[%s1107_s0 + $0x58] sm:$0xff]  ;;  %v34_v22 = vmax.f32 %v18_v20, 0.0  ;;  %v20_v24 = vld [vmem:[%s1107_s0 + $0x60] sm:$0xff]  ;;  %v21_v25 = vld [vmem:[%s1107_s0 + $0x68] sm:$0xff] }
   0x6   :  { %v35_v23 = vmax.f32 %v19_v21, 0.0  ;;  %v36_v26 = vmax.f32 %v20_v24, 0.0  ;;  %v37_v27 = vmax.f32 %v21_v25, 0.0  ;;  %v22_v28 = vld [vmem:[%s1107_s0 + $0x70] sm:$0xff]  ;;  %v23_v29 = vld [vmem:[%s1107_s0 + $0x78] sm:$0xff] }
   0x7   :  { %v38_v30 = vmax.f32 %v22_v28, 0.0  ;;  %v39_v31 = vmax.f32 %v23_v29, 0.0 }
   0x8   :  { %58 = vrot.lane.b32.xlu0 %v25_v6, %s824_s14  ;;  %62 = vrot.lane.b32.xlu1 %v27_v7, %s824_s14 }
   0xc   :  { %64 = vrot.lane.b32.xlu0 %v28_v10, %s824_s14  ;;  %66 = vrot.lane.b32.xlu1 %v29_v11, %s824_s14 }
  0x10   :  { %68 = vrot.lane.b32.xlu0 %v30_v14, %s824_s14  ;;  %70 = vrot.lane.b32.xlu1 %v31_v15, %s824_s14 }
  0x14   :  { %72 = vrot.lane.b32.xlu0 %v32_v18, %s824_s14  ;;  %74 = vrot.lane.b32.xlu1 %v33_v19, %s824_s14 }
  0x18   :  { %76 = vrot.lane.b32.xlu0 %v34_v22, %s824_s14  ;;  %78 = vrot.lane.b32.xlu1 %v35_v23, %s824_s14 }
  0x1c   :  { %80 = vrot.lane.b32.xlu0 %v36_v26, %s824_s14  ;;  %82 = vrot.lane.b32.xlu1 %v37_v27, %s824_s14 }
  0x20   :  { %84 = vrot.lane.b32.xlu0 %v38_v30, %s824_s14  ;;  %86 = vrot.lane.b32.xlu1 %v39_v31, %s824_s14 }
  0x76   :  { %v57_v32 = vpop.permute.xlu0 %56  ;;  %v61_v33 = vpop.permute.xlu1 %60 }
  0x77   :  { %v104_v34 = vmax.f32 %v24_v3, %v57_v32  ;;  %v106_v35 = vmax.f32 %v26_v4, %v61_v33 }
  0x79   :  { %136 = vrot.lane.b32.xlu0 %v104_v34, %s824_s14 }
  0x7a   :  { %v59_v36 = vpop.permute.xlu0 %58  ;;  %v63_v37 = vpop.permute.xlu1 %62 }
  0x7b   :  { %v105_v38 = vmax.f32 %v25_v6, %v59_v36  ;;  %v107_v39 = vmax.f32 %v27_v7, %v63_v37 }
  0x7d   :  { %140 = vrot.lane.b32.xlu0 %v106_v35, %s824_s14  ;;  %138 = vrot.lane.b32.xlu1 %v105_v38, %s824_s14 }
  0x7e   :  { %v65_v40 = vpop.permute.xlu0 %64  ;;  %v67_v41 = vpop.permute.xlu1 %66 }
  0x7f   :  { %v108_v42 = vmax.f32 %v28_v10, %v65_v40  ;;  %v109_v43 = vmax.f32 %v29_v11, %v67_v41 }
  0x81   :  { %142 = vrot.lane.b32.xlu1 %v107_v39, %s824_s14  ;;  %144 = vrot.lane.b32.xlu0 %v108_v42, %s824_s14 }
  0x82   :  { %v69_v44 = vpop.permute.xlu0 %68  ;;  %v71_v45 = vpop.permute.xlu1 %70 }
  0x83   :  { %v110_v46 = vmax.f32 %v30_v14, %v69_v44  ;;  %v111_v47 = vmax.f32 %v31_v15, %v71_v45 }
  0x85   :  { %146 = vrot.lane.b32.xlu1 %v109_v43, %s824_s14  ;;  %148 = vrot.lane.b32.xlu0 %v110_v46, %s824_s14 }
  0x86   :  { %v73_v48 = vpop.permute.xlu0 %72  ;;  %v75_v49 = vpop.permute.xlu1 %74 }
  0x87   :  { %v112_v50 = vmax.f32 %v32_v18, %v73_v48  ;;  %v113_v51 = vmax.f32 %v33_v19, %v75_v49 }
  0x89   :  { %150 = vrot.lane.b32.xlu1 %v111_v47, %s824_s14  ;;  %152 = vrot.lane.b32.xlu0 %v112_v50, %s824_s14 }
  0x8a   :  { %v77_v52 = vpop.permute.xlu0 %76  ;;  %v79_v53 = vpop.permute.xlu1 %78 }
  0x8b   :  { %v114_v54 = vmax.f32 %v34_v22, %v77_v52  ;;  %v115_v55 = vmax.f32 %v35_v23, %v79_v53 }
  0x8d   :  { %154 = vrot.lane.b32.xlu1 %v113_v51, %s824_s14  ;;  %156 = vrot.lane.b32.xlu0 %v114_v54, %s824_s14 }
  0x8e   :  { %v81_v56 = vpop.permute.xlu0 %80  ;;  %v83_v57 = vpop.permute.xlu1 %82 }
  0x8f   :  { %v116_v58 = vmax.f32 %v36_v26, %v81_v56  ;;  %v117_v59 = vmax.f32 %v37_v27, %v83_v57 }
  0x91   :  { %158 = vrot.lane.b32.xlu1 %v115_v55, %s824_s14  ;;  %160 = vrot.lane.b32.xlu0 %v116_v58, %s824_s14 }
  0x92   :  { %v85_v60 = vpop.permute.xlu0 %84  ;;  %v87_v61 = vpop.permute.xlu1 %86 }
  0x93   :  { %v118_v62 = vmax.f32 %v38_v30, %v85_v60  ;;  %v119_v63 = vmax.f32 %v39_v31, %v87_v61 }
  0x95   :  { %162 = vrot.lane.b32.xlu1 %v117_v59, %s824_s14  ;;  %164 = vrot.lane.b32.xlu0 %v118_v62, %s824_s14 }
  0x99   :  { %166 = vrot.lane.b32.xlu1 %v119_v63, %s824_s14 }
  0xeb   :  { %v137_v0 = vpop.permute.xlu0 %136 }
  0xec   :  { %v184_v1 = vmax.f32 %v104_v34, %v137_v0 }
  0xee   :  { %216 = vrot.lane.b32.xlu0 %v184_v1, %s824_s14 }
  0xef   :  { %v139_v2 = vpop.permute.xlu1 %138  ;;  %v141_v3 = vpop.permute.xlu0 %140 }
  0xf0   :  { %v185_v4 = vmax.f32 %v105_v38, %v139_v2  ;;  %v186_v5 = vmax.f32 %v106_v35, %v141_v3 }
  0xf2   :  { %218 = vrot.lane.b32.xlu1 %v185_v4, %s824_s14  ;;  %220 = vrot.lane.b32.xlu0 %v186_v5, %s824_s14 }
  0xf3   :  { %v143_v6 = vpop.permute.xlu1 %142  ;;  %v145_v7 = vpop.permute.xlu0 %144 }
  0xf4   :  { %v187_v8 = vmax.f32 %v107_v39, %v143_v6  ;;  %v188_v9 = vmax.f32 %v108_v42, %v145_v7 }
  0xf6   :  { %222 = vrot.lane.b32.xlu1 %v187_v8, %s824_s14  ;;  %224 = vrot.lane.b32.xlu0 %v188_v9, %s824_s14 }
  0xf7   :  { %v147_v10 = vpop.permute.xlu1 %146  ;;  %v149_v11 = vpop.permute.xlu0 %148 }
  0xf8   :  { %v189_v12 = vmax.f32 %v109_v43, %v147_v10  ;;  %v190_v13 = vmax.f32 %v110_v46, %v149_v11 }
  0xfa   :  { %226 = vrot.lane.b32.xlu1 %v189_v12, %s824_s14  ;;  %228 = vrot.lane.b32.xlu0 %v190_v13, %s824_s14 }
  0xfb   :  { %v151_v14 = vpop.permute.xlu1 %150  ;;  %v153_v15 = vpop.permute.xlu0 %152 }
  0xfc   :  { %v191_v16 = vmax.f32 %v111_v47, %v151_v14  ;;  %v192_v17 = vmax.f32 %v112_v50, %v153_v15 }
  0xfe   :  { %230 = vrot.lane.b32.xlu1 %v191_v16, %s824_s14  ;;  %232 = vrot.lane.b32.xlu0 %v192_v17, %s824_s14 }
  0xff   :  { %v155_v18 = vpop.permute.xlu1 %154  ;;  %v157_v19 = vpop.permute.xlu0 %156 }
 0x100   :  { %v193_v20 = vmax.f32 %v113_v51, %v155_v18  ;;  %v194_v21 = vmax.f32 %v114_v54, %v157_v19 }
 0x102   :  { %234 = vrot.lane.b32.xlu1 %v193_v20, %s824_s14  ;;  %236 = vrot.lane.b32.xlu0 %v194_v21, %s824_s14 }
 0x103   :  { %v159_v22 = vpop.permute.xlu1 %158  ;;  %v161_v23 = vpop.permute.xlu0 %160 }
 0x104   :  { %v195_v24 = vmax.f32 %v115_v55, %v159_v22  ;;  %v196_v25 = vmax.f32 %v116_v58, %v161_v23 }
 0x106   :  { %238 = vrot.lane.b32.xlu1 %v195_v24, %s824_s14  ;;  %240 = vrot.lane.b32.xlu0 %v196_v25, %s824_s14 }
 0x107   :  { %v163_v26 = vpop.permute.xlu1 %162  ;;  %v165_v27 = vpop.permute.xlu0 %164 }
 0x108   :  { %v197_v28 = vmax.f32 %v117_v59, %v163_v26  ;;  %v198_v29 = vmax.f32 %v118_v62, %v165_v27 }
 0x10a   :  { %242 = vrot.lane.b32.xlu1 %v197_v28, %s824_s14  ;;  %244 = vrot.lane.b32.xlu0 %v198_v29, %s824_s14 }
 0x10b   :  { %v167_v30 = vpop.permute.xlu1 %166 }
 0x10c   :  { %v199_v31 = vmax.f32 %v119_v63, %v167_v30 }
 0x10e   :  { %246 = vrot.lane.b32.xlu1 %v199_v31, %s824_s14 }
 0x160   :  { %v217_v32 = vpop.permute.xlu0 %216 }
 0x161   :  { %v264_v33 = vmax.f32 %v184_v1, %v217_v32 }
 0x163   :  { %296 = vrot.lane.b32.xlu0 %v264_v33, %s824_s14 }
 0x164   :  { %v219_v34 = vpop.permute.xlu1 %218  ;;  %v221_v35 = vpop.permute.xlu0 %220 }
 0x165   :  { %v265_v36 = vmax.f32 %v185_v4, %v219_v34  ;;  %v266_v37 = vmax.f32 %v186_v5, %v221_v35 }
 0x167   :  { %298 = vrot.lane.b32.xlu1 %v265_v36, %s824_s14  ;;  %300 = vrot.lane.b32.xlu0 %v266_v37, %s824_s14 }
 0x168   :  { %v223_v38 = vpop.permute.xlu1 %222  ;;  %v225_v39 = vpop.permute.xlu0 %224 }
 0x169   :  { %v267_v40 = vmax.f32 %v187_v8, %v223_v38  ;;  %v268_v41 = vmax.f32 %v188_v9, %v225_v39 }
 0x16b   :  { %302 = vrot.lane.b32.xlu1 %v267_v40, %s824_s14  ;;  %304 = vrot.lane.b32.xlu0 %v268_v41, %s824_s14 }
 0x16c   :  { %v227_v42 = vpop.permute.xlu1 %226  ;;  %v229_v43 = vpop.permute.xlu0 %228 }
 0x16d   :  { %v269_v44 = vmax.f32 %v189_v12, %v227_v42  ;;  %v270_v45 = vmax.f32 %v190_v13, %v229_v43 }
 0x16f   :  { %306 = vrot.lane.b32.xlu1 %v269_v44, %s824_s14  ;;  %308 = vrot.lane.b32.xlu0 %v270_v45, %s824_s14 }
 0x170   :  { %v231_v46 = vpop.permute.xlu1 %230  ;;  %v233_v47 = vpop.permute.xlu0 %232 }
 0x171   :  { %v271_v48 = vmax.f32 %v191_v16, %v231_v46  ;;  %v272_v49 = vmax.f32 %v192_v17, %v233_v47 }
 0x173   :  { %310 = vrot.lane.b32.xlu1 %v271_v48, %s824_s14  ;;  %312 = vrot.lane.b32.xlu0 %v272_v49, %s824_s14 }
 0x174   :  { %v235_v50 = vpop.permute.xlu1 %234  ;;  %v237_v51 = vpop.permute.xlu0 %236 }
 0x175   :  { %v273_v52 = vmax.f32 %v193_v20, %v235_v50  ;;  %v274_v53 = vmax.f32 %v194_v21, %v237_v51 }
 0x177   :  { %314 = vrot.lane.b32.xlu1 %v273_v52, %s824_s14  ;;  %316 = vrot.lane.b32.xlu0 %v274_v53, %s824_s14 }
 0x178   :  { %v239_v54 = vpop.permute.xlu1 %238  ;;  %v241_v55 = vpop.permute.xlu0 %240 }
 0x179   :  { %v275_v56 = vmax.f32 %v195_v24, %v239_v54  ;;  %v276_v57 = vmax.f32 %v196_v25, %v241_v55 }
 0x17b   :  { %318 = vrot.lane.b32.xlu1 %v275_v56, %s824_s14  ;;  %320 = vrot.lane.b32.xlu0 %v276_v57, %s824_s14 }
 0x17c   :  { %v243_v58 = vpop.permute.xlu1 %242  ;;  %v245_v59 = vpop.permute.xlu0 %244 }
 0x17d   :  { %v277_v60 = vmax.f32 %v197_v28, %v243_v58  ;;  %v278_v61 = vmax.f32 %v198_v29, %v245_v59 }
 0x17f   :  { %322 = vrot.lane.b32.xlu1 %v277_v60, %s824_s14  ;;  %324 = vrot.lane.b32.xlu0 %v278_v61, %s824_s14 }
 0x180   :  { %v247_v62 = vpop.permute.xlu1 %246 }
 0x181   :  { %v279_v63 = vmax.f32 %v199_v31, %v247_v62 }
 0x183   :  { %326 = vrot.lane.b32.xlu1 %v279_v63, %s824_s14 }
 0x1d5   :  { %v297_v0 = vpop.permute.xlu0 %296 }
 0x1d6   :  { %v344_v1 = vmax.f32 %v264_v33, %v297_v0 }
 0x1d8   :  { %376 = vrot.lane.b32.xlu0 %v344_v1, %s824_s14 }
 0x1d9   :  { %v299_v2 = vpop.permute.xlu1 %298  ;;  %v301_v3 = vpop.permute.xlu0 %300 }
 0x1da   :  { %v345_v4 = vmax.f32 %v265_v36, %v299_v2  ;;  %v346_v5 = vmax.f32 %v266_v37, %v301_v3 }
 0x1dc   :  { %378 = vrot.lane.b32.xlu1 %v345_v4, %s824_s14  ;;  %380 = vrot.lane.b32.xlu0 %v346_v5, %s824_s14 }
 0x1dd   :  { %v303_v6 = vpop.permute.xlu1 %302  ;;  %v305_v7 = vpop.permute.xlu0 %304 }
 0x1de   :  { %v347_v8 = vmax.f32 %v267_v40, %v303_v6  ;;  %v348_v9 = vmax.f32 %v268_v41, %v305_v7 }
 0x1e0   :  { %382 = vrot.lane.b32.xlu1 %v347_v8, %s824_s14  ;;  %384 = vrot.lane.b32.xlu0 %v348_v9, %s824_s14 }
 0x1e1   :  { %v307_v10 = vpop.permute.xlu1 %306  ;;  %v309_v11 = vpop.permute.xlu0 %308 }
 0x1e2   :  { %v349_v12 = vmax.f32 %v269_v44, %v307_v10  ;;  %v350_v13 = vmax.f32 %v270_v45, %v309_v11 }
 0x1e4   :  { %386 = vrot.lane.b32.xlu1 %v349_v12, %s824_s14  ;;  %388 = vrot.lane.b32.xlu0 %v350_v13, %s824_s14 }
 0x1e5   :  { %v311_v14 = vpop.permute.xlu1 %310  ;;  %v313_v15 = vpop.permute.xlu0 %312 }
 0x1e6   :  { %v954_v16 = vmax.f32 %v271_v48, %v311_v14  ;;  %v956_v17 = vmax.f32 %v272_v49, %v313_v15 }
 0x1e8   :  { %390 = vrot.lane.b32.xlu1 %v954_v16, %s824_s14  ;;  %392 = vrot.lane.b32.xlu0 %v956_v17, %s824_s14 }
 0x1e9   :  { %v315_v18 = vpop.permute.xlu1 %314  ;;  %v317_v19 = vpop.permute.xlu0 %316 }
 0x1ea   :  { %v962_v20 = vmax.f32 %v273_v52, %v315_v18  ;;  %v964_v21 = vmax.f32 %v274_v53, %v317_v19 }
 0x1ec   :  { %394 = vrot.lane.b32.xlu1 %v962_v20, %s824_s14  ;;  %396 = vrot.lane.b32.xlu0 %v964_v21, %s824_s14 }
 0x1ed   :  { %v319_v22 = vpop.permute.xlu1 %318  ;;  %v321_v23 = vpop.permute.xlu0 %320 }
 0x1ee   :  { %v970_v24 = vmax.f32 %v275_v56, %v319_v22  ;;  %v972_v25 = vmax.f32 %v276_v57, %v321_v23 }
 0x1f0   :  { %398 = vrot.lane.b32.xlu1 %v970_v24, %s824_s14  ;;  %400 = vrot.lane.b32.xlu0 %v972_v25, %s824_s14 }
 0x1f1   :  { %v323_v26 = vpop.permute.xlu1 %322  ;;  %v325_v27 = vpop.permute.xlu0 %324 }
 0x1f2   :  { %v978_v28 = vmax.f32 %v277_v60, %v323_v26  ;;  %v980_v29 = vmax.f32 %v278_v61, %v325_v27 }
 0x1f4   :  { %402 = vrot.lane.b32.xlu1 %v978_v28, %s824_s14  ;;  %404 = vrot.lane.b32.xlu0 %v980_v29, %s824_s14 }
 0x1f5   :  { %v327_v30 = vpop.permute.xlu1 %326 }
 0x1f6   :  { %v986_v31 = vmax.f32 %v279_v63, %v327_v30 }
 0x1f8   :  { %406 = vrot.lane.b32.xlu1 %v986_v31, %s824_s14 }
 0x24a   :  { %v377_v32 = vpop.permute.xlu0 %376 }
 0x24b   :  { %v424_v33 = vmax.f32 %v344_v1, %v377_v32 }
 0x24d   :  { %v457_v37 = vrot.slane %v424_v33, 1 }
 0x24e   :  { %v379_v34 = vpop.permute.xlu1 %378  ;;  %v381_v35 = vpop.permute.xlu0 %380 }
 0x24f   :  { %v425_v36 = vmax.f32 %v345_v4, %v379_v34  ;;  %v426_v39 = vmax.f32 %v346_v5, %v381_v35 }
 0x251   :  { %v458_v38 = vrot.slane %v425_v36, 1  ;;  %v460_v48 = vrot.slane %v426_v39, 1 }
 0x252   :  { %v383_v40 = vpop.permute.xlu1 %382  ;;  %v385_v41 = vpop.permute.xlu0 %384 }
 0x253   :  { %v459_v42 = vsel %vm456_vm0, %v457_v37, %v458_v38  ;;  %v498_v43 = vmax.f32 %v425_v36, %v458_v38  ;;  %v427_v44 = vmax.f32 %v347_v8, %v383_v40  ;;  %v428_v46 = vmax.f32 %v348_v9, %v385_v41 }
 0x254   :  { %v497_v45 = vmax.f32 %v424_v33, %v459_v42 }
 0x255   :  { %v530_v47 = vrot.slane %v498_v43, 1  ;;  %v461_v49 = vrot.slane %v427_v44, 1  ;;  %v463_v59 = vrot.slane %v428_v46, 1 }
 0x256   :  { %v529_v50 = vrot.slane %v497_v45, 1  ;;  %v387_v51 = vpop.permute.xlu1 %386  ;;  %v389_v52 = vpop.permute.xlu0 %388 }
 0x257   :  { %v570_v53 = vmax.f32 %v498_v43, %v530_v47  ;;  %v462_v54 = vsel %vm456_vm0, %v460_v48, %v461_v49  ;;  %v500_v55 = vmax.f32 %v427_v44, %v461_v49  ;;  %v429_v56 = vmax.f32 %v349_v12, %v387_v51 }
 0x258   :  { %v531_v57 = vsel %vm456_vm0, %v529_v50, %v530_v47  ;;  %v499_v58 = vmax.f32 %v426_v39, %v462_v54  ;;  %v430_v60 = vmax.f32 %v350_v13, %v389_v52 }
 0x259   :  { %v569_v61 = vmax.f32 %v497_v45, %v531_v57  ;;  %v602_v62 = vrot.slane %v570_v53, 1  ;;  %v533_v63 = vrot.slane %v500_v55, 1  ;;  %v464_v0 = vrot.slane %v429_v56, 1 }
 0x25a   :  { %v532_v1 = vrot.slane %v499_v58, 1  ;;  %v466_v2 = vrot.slane %v430_v60, 1  ;;  %v391_v3 = vpop.permute.xlu1 %390  ;;  %v393_v12 = vpop.permute.xlu0 %392 }
 0x25b   :  { %v601_v4 = vrot.slane %v569_v61, 1  ;;  %v642_v5 = vmax.f32 %v570_v53, %v602_v62  ;;  %v572_v6 = vmax.f32 %v500_v55, %v533_v63  ;;  %v465_v7 = vsel %vm456_vm0, %v463_v59, %v464_v0 }
 0x25c   :  { %v534_v8 = vsel %vm456_vm0, %v532_v1, %v533_v63  ;;  %v501_v9 = vmax.f32 %v428_v46, %v465_v7  ;;  %v502_v10 = vmax.f32 %v429_v56, %v464_v0  ;;  %v431_v11 = vmax.f32 %v954_v16, %v391_v3 }
 0x25d   :  { %v603_v13 = vsel %vm456_vm0, %v601_v4, %v602_v62  ;;  %v674_v14 = vrot.slane %v642_v5, 1  ;;  %v571_v15 = vmax.f32 %v499_v58, %v534_v8  ;;  %v605_v18 = vrot.slane %v572_v6, 1 }
 0x25e   :  { %v641_v19 = vmax.f32 %v569_v61, %v603_v13  ;;  %v535_v22 = vrot.slane %v501_v9, 1  ;;  %v536_v23 = vrot.slane %v502_v10, 1  ;;  %v467_v26 = vrot.slane %v431_v11, 1  ;;  %v395_v41 = vpop.permute.xlu1 %394  ;;  %v397_v57 = vpop.permute.xlu0 %396 }
 0x25f   :  { %v714_v27 = vmax.f32 %v642_v5, %v674_v14  ;;  %v604_v30 = vrot.slane %v571_v15, 1  ;;  %v644_v32 = vmax.f32 %v572_v6, %v605_v18  ;;  %v998_v33 = vmax.f32 %v956_v17, %v393_v12 }
 0x260   :  { %v673_v34 = vrot.slane %v641_v19, 1  ;;  %v537_v16 = vsel %vm456_vm0, %v535_v22, %v536_v23  ;;  %v574_v35 = vmax.f32 %v502_v10, %v536_v23  ;;  %v468_v36 = vsel %vm456_vm0, %v466_v2, %v467_v26 }
 0x261   :  { %v746_v37 = vrot.slane %v714_v27, 1  ;;  %v606_v38 = vsel %vm456_vm0, %v604_v30, %v605_v18  ;;  %v677_v39 = vrot.slane %v644_v32, 1  ;;  %v573_v40 = vmax.f32 %v501_v9, %v537_v16 }
 0x262   :  { %v675_v42 = vsel %vm456_vm0, %v673_v34, %v674_v14  ;;  %v643_v43 = vmax.f32 %v571_v15, %v606_v38  ;;  %v608_v44 = vrot.slane %v574_v35, 1  ;;  %v503_v45 = vmax.f32 %v430_v60, %v468_v36  ;;  %v399_v2 = vpop.permute.xlu1 %398  ;;  %v401_v22 = vpop.permute.xlu0 %400 }
 0x263   :  { %v713_v46 = vmax.f32 %v641_v19, %v675_v42  ;;  %v786_v17 = vmax.f32 %v714_v27, %v746_v37  ;;  %v716_v47 = vmax.f32 %v644_v32, %v677_v39  ;;  %v607_v48 = vrot.slane %v573_v40, 1 }
 0x264   :  { %v676_v49 = vrot.slane %v643_v43, 1  ;;  %v646_v50 = vmax.f32 %v574_v35, %v608_v44  ;;  %v504_v51 = vmax.f32 %v431_v11, %v467_v26  ;;  %v538_v52 = vrot.slane %v503_v45, 1 }
 0x265   :  { %v745_v53 = vrot.slane %v713_v46, 1  ;;  %804 = vst.msk [vmem:[%s1108_s1 + $0x8] sm:$0x7] %vm803_vm1, %v786_v17  ;;  %v749_v54 = vrot.slane %v716_v47, 1  ;;  %v609_v55 = vsel %vm456_vm0, %v607_v48, %v608_v44  ;;  %v469_v56 = vrot.slane %v998_v33, 1 }
 0x266   :  { %v678_v58 = vsel %vm456_vm0, %v676_v49, %v677_v39  ;;  %v645_v59 = vmax.f32 %v573_v40, %v609_v55  ;;  %v680_v60 = vrot.slane %v646_v50, 1  ;;  %v539_v61 = vrot.slane %v504_v51, 1  ;;  %v403_v48 = vpop.permute.xlu1 %402  ;;  %v405_v49 = vpop.permute.xlu0 %404 }
 0x267   :  { %v747_v62 = vsel %vm456_vm0, %v745_v53, %v746_v37  ;;  %v715_v63 = vmax.f32 %v643_v43, %v678_v58  ;;  %v788_v0 = vmax.f32 %v716_v47, %v749_v54  ;;  %v433_v1 = vmax.f32 %v962_v20, %v395_v41 }
 0x268   :  { %v785_v3 = vmax.f32 %v713_v46, %v747_v62  ;;  %v679_v4 = vrot.slane %v645_v59, 1  ;;  %v718_v5 = vmax.f32 %v646_v50, %v680_v60  ;;  %v540_v6 = vsel %vm456_vm0, %v538_v52, %v539_v61 }
 0x269   :  { %v748_v7 = vrot.slane %v715_v63, 1  ;;  %806 = vst.msk [vmem:[%s1108_s1 + $0x18] sm:$0x7] %vm803_vm1, %v788_v0  ;;  %v575_v8 = vmax.f32 %v503_v45, %v540_v6  ;;  %v576_v9 = vmax.f32 %v504_v51, %v539_v61  ;;  %v470_v10 = vrot.slane %v433_v1, 1 }
 0x26a   :  { %802 = vst.msk [vmem:[%s1108_s1] sm:$0xff] %vm801_vm2, %v785_v3  ;;  %v681_v20 = vsel %vm456_vm0, %v679_v4, %v680_v60  ;;  %v752_v11 = vrot.slane %v718_v5, 1  ;;  %v434_v12 = vmax.f32 %v964_v21, %v397_v57  ;;  %v435_v13 = vmax.f32 %v970_v24, %v399_v2 }
 0x26b   :  { %v750_v14 = vsel %vm456_vm0, %v748_v7, %v749_v54  ;;  %v717_v15 = vmax.f32 %v645_v59, %v681_v20  ;;  %v610_v18 = vrot.slane %v575_v8, 1  ;;  %v611_v19 = vrot.slane %v576_v9, 1 }
 0x26c   :  { %v787_v23 = vmax.f32 %v715_v63, %v750_v14  ;;  %v790_v26 = vmax.f32 %v718_v5, %v752_v11  ;;  %v471_v27 = vsel %vm456_vm0, %v469_v56, %v470_v10  ;;  %v506_v30 = vmax.f32 %v433_v1, %v470_v10 }
 0x26d   :  { %v751_v32 = vrot.slane %v717_v15, 1  ;;  %v612_v34 = vsel %vm456_vm0, %v610_v18, %v611_v19  ;;  %v648_v16 = vmax.f32 %v576_v9, %v611_v19  ;;  %v505_v35 = vmax.f32 %v998_v33, %v471_v27 }
 0x26e   :  { %805 = vst.msk [vmem:[%s1108_s1 + $0x10] sm:$0xff] %vm801_vm2, %v787_v23  ;;  %v647_v21 = vmax.f32 %v575_v8, %v612_v34  ;;  %v542_v24 = vrot.slane %v506_v30, 1  ;;  %v472_v36 = vrot.slane %v434_v12, 1  ;;  %v473_v37 = vrot.slane %v435_v13, 1 }
 0x26f   :  { %808 = vst.msk [vmem:[%s1108_s1 + $0x28] sm:$0x7] %vm803_vm1, %v790_v26  ;;  %v753_v38 = vsel %vm456_vm0, %v751_v32, %v752_v11  ;;  %v683_v39 = vrot.slane %v648_v16, 1  ;;  %v541_v40 = vrot.slane %v505_v35, 1  ;;  %v436_v33 = vmax.f32 %v972_v25, %v401_v22 }
 0x270   :  { %v789_v41 = vmax.f32 %v717_v15, %v753_v38  ;;  %v682_v42 = vrot.slane %v647_v21, 1  ;;  %v578_v43 = vmax.f32 %v506_v30, %v542_v24  ;;  %v474_v44 = vsel %vm456_vm0, %v472_v36, %v473_v37 }
 0x271   :  { %v720_v45 = vmax.f32 %v648_v16, %v683_v39  ;;  %v543_v46 = vsel %vm456_vm0, %v541_v40, %v542_v24  ;;  %v507_v17 = vmax.f32 %v434_v12, %v474_v44  ;;  %v508_v47 = vmax.f32 %v435_v13, %v473_v37 }
 0x272   :  { %807 = vst.msk [vmem:[%s1108_s1 + $0x20] sm:$0xff] %vm801_vm2, %v789_v41  ;;  %v684_v50 = vsel %vm456_vm0, %v682_v42, %v683_v39  ;;  %v577_v25 = vmax.f32 %v505_v35, %v543_v46  ;;  %v614_v51 = vrot.slane %v578_v43, 1  ;;  %v475_v52 = vrot.slane %v436_v33, 1 }
 0x273   :  { %v719_v53 = vmax.f32 %v647_v21, %v684_v50  ;;  %v755_v54 = vrot.slane %v720_v45, 1  ;;  %v544_v55 = vrot.slane %v507_v17, 1  ;;  %v545_v56 = vrot.slane %v508_v47, 1 }
 0x274   :  { %v613_v57 = vrot.slane %v577_v25, 1  ;;  %v650_v58 = vmax.f32 %v578_v43, %v614_v51  ;;  %v437_v59 = vmax.f32 %v978_v28, %v403_v48  ;;  %v438_v60 = vmax.f32 %v980_v29, %v405_v49  ;;  %v407_v29 = vpop.permute.xlu1 %406 }
 0x275   :  { %v754_v61 = vrot.slane %v719_v53, 1  ;;  %v792_v62 = vmax.f32 %v720_v45, %v755_v54  ;;  %v546_v63 = vsel %vm456_vm0, %v544_v55, %v545_v56  ;;  %v580_v0 = vmax.f32 %v508_v47, %v545_v56 }
 0x276   :  { %v615_v1 = vsel %vm456_vm0, %v613_v57, %v614_v51  ;;  %v686_v2 = vrot.slane %v650_v58, 1  ;;  %v579_v3 = vmax.f32 %v507_v17, %v546_v63  ;;  %v476_v4 = vrot.slane %v437_v59, 1 }
 0x277   :  { %v756_v5 = vsel %vm456_vm0, %v754_v61, %v755_v54  ;;  %810 = vst.msk [vmem:[%s1108_s1 + $0x38] sm:$0x7] %vm803_vm1, %v792_v62  ;;  %v649_v28 = vmax.f32 %v577_v25, %v615_v1  ;;  %v617_v6 = vrot.slane %v580_v0, 1  ;;  %v478_v18 = vrot.slane %v438_v60, 1 }
 0x278   :  { %v791_v7 = vmax.f32 %v719_v53, %v756_v5  ;;  %v722_v8 = vmax.f32 %v650_v58, %v686_v2  ;;  %v616_v9 = vrot.slane %v579_v3, 1  ;;  %v477_v10 = vsel %vm456_vm0, %v475_v52, %v476_v4 }
 0x279   :  { %v685_v20 = vrot.slane %v649_v28, 1  ;;  %v652_v11 = vmax.f32 %v580_v0, %v617_v6  ;;  %v509_v12 = vmax.f32 %v436_v33, %v477_v10  ;;  %v510_v13 = vmax.f32 %v437_v59, %v476_v4 }
 0x27a   :  { %809 = vst.msk [vmem:[%s1108_s1 + $0x30] sm:$0xff] %vm801_vm2, %v791_v7  ;;  %v758_v14 = vrot.slane %v722_v8, 1  ;;  %v618_v15 = vsel %vm456_vm0, %v616_v9, %v617_v6  ;;  %v439_v19 = vmax.f32 %v986_v31, %v407_v29 }
 0x27b   :  { %v687_v22 = vsel %vm456_vm0, %v685_v20, %v686_v2  ;;  %v651_v23 = vmax.f32 %v579_v3, %v618_v15  ;;  %v689_v26 = vrot.slane %v652_v11, 1  ;;  %v547_v27 = vrot.slane %v509_v12, 1 }
 0x27c   :  { %v721_v30 = vmax.f32 %v649_v28, %v687_v22  ;;  %v794_v32 = vmax.f32 %v722_v8, %v758_v14  ;;  %v548_v34 = vrot.slane %v510_v13, 1  ;;  %v479_v16 = vrot.slane %v439_v19, 1 }
 0x27d   :  { %v688_v35 = vrot.slane %v651_v23, 1  ;;  %v724_v21 = vmax.f32 %v652_v11, %v689_v26 }
 0x27e   :  { %v757_v24 = vrot.slane %v721_v30, 1  ;;  %812 = vst.msk [vmem:[%s1108_s1 + $0x48] sm:$0x7] %vm803_vm1, %v794_v32  ;;  %v549_v36 = vsel %vm456_vm0, %v547_v27, %v548_v34  ;;  %v582_v31 = vmax.f32 %v510_v13, %v548_v34  ;;  %v480_v37 = vsel %vm456_vm0, %v478_v18, %v479_v16 }
 0x27f   :  { %v690_v38 = vsel %vm456_vm0, %v688_v35, %v689_v26  ;;  %v761_v39 = vrot.slane %v724_v21, 1  ;;  %v581_v40 = vmax.f32 %v509_v12, %v549_v36  ;;  %v511_v33 = vmax.f32 %v438_v60, %v480_v37 }
 0x280   :  { %v759_v41 = vsel %vm456_vm0, %v757_v24, %v758_v14  ;;  %v723_v42 = vmax.f32 %v651_v23, %v690_v38  ;;  %v620_v43 = vrot.slane %v582_v31, 1  ;;  %v512_v44 = vmax.f32 %v439_v19, %v479_v16 }
 0x281   :  { %v793_v45 = vmax.f32 %v721_v30, %v759_v41  ;;  %v796_v46 = vmax.f32 %v724_v21, %v761_v39  ;;  %v619_v17 = vrot.slane %v581_v40, 1  ;;  %v550_v47 = vrot.slane %v511_v33, 1 }
 0x282   :  { %v760_v48 = vrot.slane %v723_v42, 1  ;;  %v654_v49 = vmax.f32 %v582_v31, %v620_v43  ;;  %v551_v50 = vrot.slane %v512_v44, 1 }
 0x283   :  { %811 = vst.msk [vmem:[%s1108_s1 + $0x40] sm:$0xff] %vm801_vm2, %v793_v45  ;;  %v621_v25 = vsel %vm456_vm0, %v619_v17, %v620_v43 }
 0x284   :  { %814 = vst.msk [vmem:[%s1108_s1 + $0x58] sm:$0x7] %vm803_vm1, %v796_v46  ;;  %v762_v51 = vsel %vm456_vm0, %v760_v48, %v761_v39  ;;  %v653_v52 = vmax.f32 %v581_v40, %v621_v25  ;;  %v692_v53 = vrot.slane %v654_v49, 1  ;;  %v552_v54 = vsel %vm456_vm0, %v550_v47, %v551_v50 }
 0x285   :  { %v795_v55 = vmax.f32 %v723_v42, %v762_v51  ;;  %v583_v56 = vmax.f32 %v511_v33, %v552_v54  ;;  %v584_v57 = vmax.f32 %v512_v44, %v551_v50 }
 0x286   :  { %v691_v58 = vrot.slane %v653_v52, 1  ;;  %v726_v59 = vmax.f32 %v654_v49, %v692_v53 }
 0x287   :  { %813 = vst.msk [vmem:[%s1108_s1 + $0x50] sm:$0xff] %vm801_vm2, %v795_v55  ;;  %v622_v60 = vrot.slane %v583_v56, 1  ;;  %v623_v61 = vrot.slane %v584_v57, 1 }
 0x288   :  { %v693_v62 = vsel %vm456_vm0, %v691_v58, %v692_v53  ;;  %v764_v63 = vrot.slane %v726_v59, 1 }
 0x289   :  { %v725_v0 = vmax.f32 %v653_v52, %v693_v62  ;;  %v624_v1 = vsel %vm456_vm0, %v622_v60, %v623_v61  ;;  %v656_v2 = vmax.f32 %v584_v57, %v623_v61 }
 0x28a   :  { %v798_v3 = vmax.f32 %v726_v59, %v764_v63  ;;  %v655_v4 = vmax.f32 %v583_v56, %v624_v1 }
 0x28b   :  { %v763_v5 = vrot.slane %v725_v0, 1  ;;  %v695_v28 = vrot.slane %v656_v2, 1 }
 0x28c   :  { %816 = vst.msk [vmem:[%s1108_s1 + $0x68] sm:$0x7] %vm803_vm1, %v798_v3  ;;  %v694_v6 = vrot.slane %v655_v4, 1 }
 0x28d   :  { %v765_v29 = vsel %vm456_vm0, %v763_v5, %v764_v63  ;;  %v728_v7 = vmax.f32 %v656_v2, %v695_v28 }
 0x28e   :  { %v797_v8 = vmax.f32 %v725_v0, %v765_v29  ;;  %v696_v9 = vsel %vm456_vm0, %v694_v6, %v695_v28 }
 0x28f   :  { %v727_v10 = vmax.f32 %v655_v4, %v696_v9  ;;  %v767_v20 = vrot.slane %v728_v7, 1 }
 0x290   :  { %815 = vst.msk [vmem:[%s1108_s1 + $0x60] sm:$0xff] %vm801_vm2, %v797_v8 }
 0x291   :  { %v766_v11 = vrot.slane %v727_v10, 1  ;;  %v800_v12 = vmax.f32 %v728_v7, %v767_v20 }
 0x293   :  { %v768_v13 = vsel %vm456_vm0, %v766_v11, %v767_v20  ;;  %818 = vst.msk [vmem:[%s1108_s1 + $0x78] sm:$0x7] %vm803_vm1, %v800_v12 }
 0x294   :  { %v799_v14 = vmax.f32 %v727_v10, %v768_v13 }
 0x296   :  { %817 = vst.msk [vmem:[%s1108_s1 + $0x70] sm:$0xff] %vm801_vm2, %v799_v14 }

// kernel: forward.7
= control target key start
LH: loop header
LB: loop body
LE: loop exit
PB: predicated region body
PF: predicated region fallthrough
CT: control target
= control target key end

     0   :  { %s612_s1 = inlined_call_operand.vmem [shape: f32[512,128], index: 1, kind: input, shape index: {}]   ;;  %s613_s0 = inlined_call_operand.vmem [shape: f32[8,512], index: 0, kind: input, shape index: {}]   ;;  %s614_s2 = inlined_call_operand.vmem [shape: f32[1,128], index: 2, kind: input, shape index: {}]   ;;  %s615_s3 = inlined_call_operand.vmem [shape: f32[8,128], index: 3, kind: output, shape index: {}]  }
   0x1   :  { %v40_v0 = vld [vmem:[%s612_s1 + $0x80] sm:$0xff]  ;;  %v41_v1 = vld [vmem:[%s612_s1 + $0x88] sm:$0xff]  ;;  %v42_v11 = vld [vmem:[%s612_s1 + $0x90] sm:$0xff] }
   0x2   :  { %v72_v2 = vld [vmem:[%s612_s1 + $0x180] sm:$0xff]  ;;  %v318_v3 = vpack.c.bf16 %v41_v1, %v40_v0  ;;  %v73_v4 = vld [vmem:[%s612_s1 + $0x188] sm:$0xff]  ;;  %v43_v13 = vld [vmem:[%s612_s1 + $0x98] sm:$0xff] }
   0x3   :  { %v24_v5 = vld [vmem:[%s612_s1] sm:$0xff]  ;;  %v25_v6 = vld [vmem:[%s612_s1 + $0x8] sm:$0xff]  ;;  %v350_v7 = vpack.c.bf16 %v73_v4, %v72_v2  ;;  %v74_v14 = vld [vmem:[%s612_s1 + $0x190] sm:$0xff]  ;;  %v322_v16 = vpack.c.bf16 %v43_v13, %v42_v11 }
   0x4   :  { %v320_v8 = vpack.c.bf16 %v25_v6, %v24_v5  ;;  %v56_v9 = vld [vmem:[%s612_s1 + $0x100] sm:$0xff]  ;;  %v57_v10 = vld [vmem:[%s612_s1 + $0x108] sm:$0xff]  ;;  %319 = vmatprep.subr.bf16.mxu0 %v318_v3  ;;  %v75_v15 = vld [vmem:[%s612_s1 + $0x198] sm:$0xff] }
   0x5   :  { %v352_v12 = vpack.c.bf16 %v57_v10, %v56_v9  ;;  %351 = vmatprep.subr.bf16.mxu1 %v350_v7  ;;  %v354_v17 = vpack.c.bf16 %v75_v15, %v74_v14  ;;  %v26_v18 = vld [vmem:[%s612_s1 + $0x10] sm:$0xff]  ;;  %v27_v19 = vld [vmem:[%s612_s1 + $0x18] sm:$0xff]  ;;  %v44_v23 = vld [vmem:[%s612_s1 + $0xa0] sm:$0xff] }
   0x6   :  { %321 = vmatpush3.bf16.msra.mxu0 %v320_v8  ;;  %v58_v20 = vld [vmem:[%s612_s1 + $0x110] sm:$0xff]  ;;  %v324_v21 = vpack.c.bf16 %v27_v19, %v26_v18  ;;  %v59_v22 = vld [vmem:[%s612_s1 + $0x118] sm:$0xff]  ;;  %v45_v24 = vld [vmem:[%s612_s1 + $0xa8] sm:$0xff] }
   0x7   :  { %353 = vmatpush3.bf16.msra.mxu1 %v352_v12  ;;  %323 = vmatprep.subr.bf16.mxu0 %v322_v16  ;;  %v356_v25 = vpack.c.bf16 %v59_v22, %v58_v20  ;;  %v326_v26 = vpack.c.bf16 %v45_v24, %v44_v23  ;;  %v76_v27 = vld [vmem:[%s612_s1 + $0x1a0] sm:$0xff]  ;;  %v77_v28 = vld [vmem:[%s612_s1 + $0x1a8] sm:$0xff]  ;;  %v46_v35 = vld [vmem:[%s612_s1 + $0xb0] sm:$0xff] }
   0x8   :  { %355 = vmatprep.subr.bf16.mxu1 %v354_v17  ;;  %v28_v29 = vld [vmem:[%s612_s1 + $0x20] sm:$0xff]  ;;  %v358_v30 = vpack.c.bf16 %v77_v28, %v76_v27  ;;  %v29_v31 = vld [vmem:[%s612_s1 + $0x28] sm:$0xff]  ;;  %v47_v36 = vld [vmem:[%s612_s1 + $0xb8] sm:$0xff] }
   0x9   :  { %v60_v32 = vld [vmem:[%s612_s1 + $0x120] sm:$0xff]  ;;  %v61_v33 = vld [vmem:[%s612_s1 + $0x128] sm:$0xff]  ;;  %v328_v34 = vpack.c.bf16 %v29_v31, %v28_v29  ;;  %v78_v37 = vld [vmem:[%s612_s1 + $0x1b0] sm:$0xff]  ;;  %v330_v39 = vpack.c.bf16 %v47_v36, %v46_v35 }
   0xa   :  { %325 = vmatpush3.bf16.msra.mxu0 %v324_v21  ;;  %v360_v38 = vpack.c.bf16 %v61_v33, %v60_v32  ;;  %v79_v40 = vld [vmem:[%s612_s1 + $0x1b8] sm:$0xff]  ;;  %v30_v41 = vld [vmem:[%s612_s1 + $0x30] sm:$0xff]  ;;  %v48_v46 = vld [vmem:[%s612_s1 + $0xc0] sm:$0xff] }
   0xb   :  { %357 = vmatpush3.bf16.msra.mxu1 %v356_v25  ;;  %327 = vmatprep.subr.bf16.mxu0 %v326_v26  ;;  %v31_v42 = vld [vmem:[%s612_s1 + $0x38] sm:$0xff]  ;;  %v362_v43 = vpack.c.bf16 %v79_v40, %v78_v37  ;;  %v62_v44 = vld [vmem:[%s612_s1 + $0x130] sm:$0xff]  ;;  %v49_v47 = vld [vmem:[%s612_s1 + $0xc8] sm:$0xff] }
   0xc   :  { %359 = vmatprep.subr.bf16.mxu1 %v358_v30  ;;  %v63_v45 = vld [vmem:[%s612_s1 + $0x138] sm:$0xff]  ;;  %v80_v48 = vld [vmem:[%s612_s1 + $0x1c0] sm:$0xff]  ;;  %v81_v49 = vld [vmem:[%s612_s1 + $0x1c8] sm:$0xff]  ;;  %v332_v50 = vpack.c.bf16 %v31_v42, %v30_v41  ;;  %v334_v52 = vpack.c.bf16 %v49_v47, %v48_v46 }
   0xd   :  { %v364_v51 = vpack.c.bf16 %v63_v45, %v62_v44  ;;  %v32_v53 = vld [vmem:[%s612_s1 + $0x40] sm:$0xff]  ;;  %v33_v54 = vld [vmem:[%s612_s1 + $0x48] sm:$0xff]  ;;  %v366_v56 = vpack.c.bf16 %v81_v49, %v80_v48  ;;  %v50_v58 = vld [vmem:[%s612_s1 + $0xd0] sm:$0xff] }
   0xe   :  { %329 = vmatpush3.bf16.msra.mxu0 %v328_v34  ;;  %v64_v55 = vld [vmem:[%s612_s1 + $0x140] sm:$0xff]  ;;  %v65_v57 = vld [vmem:[%s612_s1 + $0x148] sm:$0xff]  ;;  %v51_v59 = vld [vmem:[%s612_s1 + $0xd8] sm:$0xff]  ;;  %v336_v62 = vpack.c.bf16 %v33_v54, %v32_v53 }
   0xf   :  { %361 = vmatpush3.bf16.msra.mxu1 %v360_v38  ;;  %331 = vmatprep.subr.bf16.mxu0 %v330_v39  ;;  %v82_v60 = vld [vmem:[%s612_s1 + $0x1d0] sm:$0xff]  ;;  %v83_v61 = vld [vmem:[%s612_s1 + $0x1d8] sm:$0xff]  ;;  %v368_v63 = vpack.c.bf16 %v65_v57, %v64_v55  ;;  %v338_v0 = vpack.c.bf16 %v51_v59, %v50_v58  ;;  %v52_v6 = vld [vmem:[%s612_s1 + $0xe0] sm:$0xff] }
  0x10   :  { %363 = vmatprep.subr.bf16.mxu1 %v362_v43  ;;  %v34_v1 = vld [vmem:[%s612_s1 + $0x50] sm:$0xff]  ;;  %v35_v2 = vld [vmem:[%s612_s1 + $0x58] sm:$0xff]  ;;  %v370_v4 = vpack.c.bf16 %v83_v61, %v82_v60  ;;  %v53_v7 = vld [vmem:[%s612_s1 + $0xe8] sm:$0xff] }
  0x11   :  { %v66_v3 = vld [vmem:[%s612_s1 + $0x150] sm:$0xff]  ;;  %v67_v5 = vld [vmem:[%s612_s1 + $0x158] sm:$0xff]  ;;  %v84_v8 = vld [vmem:[%s612_s1 + $0x1e0] sm:$0xff]  ;;  %v340_v10 = vpack.c.bf16 %v35_v2, %v34_v1  ;;  %v342_v14 = vpack.c.bf16 %v53_v7, %v52_v6 }
  0x12   :  { %333 = vmatpush3.bf16.msra.mxu0 %v332_v50  ;;  %v85_v9 = vld [vmem:[%s612_s1 + $0x1e8] sm:$0xff]  ;;  %v36_v11 = vld [vmem:[%s612_s1 + $0x60] sm:$0xff]  ;;  %v372_v13 = vpack.c.bf16 %v67_v5, %v66_v3  ;;  %v23_v17 = vld [vmem:[%s613_s0 + $0x18] sm:$0xff] }
  0x13   :  { %365 = vmatpush3.bf16.msra.mxu1 %v364_v51  ;;  %335 = vmatprep.subr.bf16.mxu0 %v334_v52  ;;  %v37_v12 = vld [vmem:[%s612_s1 + $0x68] sm:$0xff]  ;;  %v68_v15 = vld [vmem:[%s612_s1 + $0x160] sm:$0xff]  ;;  %v374_v18 = vpack.c.bf16 %v85_v9, %v84_v8  ;;  %v54_v20 = vld [vmem:[%s612_s1 + $0xf0] sm:$0xff] }
  0x14   :  { %367 = vmatprep.subr.bf16.mxu1 %v366_v56  ;;  %v21_v16 = vld [vmem:[%s613_s0 + $0x8] sm:$0xff]  ;;  %v55_v21 = vld [vmem:[%s612_s1 + $0xf8] sm:$0xff]  ;;  %v86_v22 = vld [vmem:[%s612_s1 + $0x1f0] sm:$0xff]  ;;  %222 = vmatprep.mubr.f32.mxu1 %v23_v17  ;;  %v344_v24 = vpack.c.bf16 %v37_v12, %v36_v11 }
  0x15   :  { %v69_v19 = vld [vmem:[%s612_s1 + $0x168] sm:$0xff]  ;;  %152 = vmatprep.mubr.f32.mxu0 %v21_v16  ;;  %v87_v23 = vld [vmem:[%s612_s1 + $0x1f8] sm:$0xff]  ;;  %v346_v26 = vpack.c.bf16 %v55_v21, %v54_v20  ;;  %v38_v27 = vld [vmem:[%s612_s1 + $0x70] sm:$0xff] }
  0x16   :  { %337 = vmatpush3.bf16.msra.mxu0 %v336_v62  ;;  %v376_v25 = vpack.c.bf16 %v69_v19, %v68_v15  ;;  %v39_v28 = vld [vmem:[%s612_s1 + $0x78] sm:$0xff]  ;;  %v378_v29 = vpack.c.bf16 %v87_v23, %v86_v22  ;;  %v70_v30 = vld [vmem:[%s612_s1 + $0x170] sm:$0xff]  ;;  %v20_v34 = vld [vmem:[%s613_s0] sm:$0xff] }
  0x17   :  { %369 = vmatpush3.bf16.msra.mxu1 %v368_v63  ;;  %339 = vmatprep.subr.bf16.mxu0 %v338_v0  ;;  %v71_v31 = vld [vmem:[%s612_s1 + $0x178] sm:$0xff]  ;;  %v348_v32 = vpack.c.bf16 %v39_v28, %v38_v27  ;;  %v22_v35 = vld [vmem:[%s613_s0 + $0x10] sm:$0xff]  ;;  %v247_v42 = vld [vmem:[%s614_s2] ss:$0 sm:$0xff] }
  0x18   :  { %371 = vmatprep.subr.bf16.mxu1 %v370_v4  ;;  %v380_v33 = vpack.c.bf16 %v71_v31, %v70_v30 }
  0x1a   :  { %341 = vmatpush3.bf16.msra.mxu0 %v340_v10 }
  0x1b   :  { %373 = vmatpush3.bf16.msra.mxu1 %v372_v13  ;;  %343 = vmatprep.subr.bf16.mxu0 %v342_v14 }
  0x1c   :  { %375 = vmatprep.subr.bf16.mxu1 %v374_v18 }
  0x1e   :  { %345 = vmatpush3.bf16.msra.mxu0 %v344_v24 }
  0x1f   :  { %377 = vmatpush3.bf16.msra.mxu1 %v376_v25  ;;  %347 = vmatprep.subr.bf16.mxu0 %v346_v26 }
  0x20   :  { %379 = vmatprep.subr.bf16.mxu1 %v378_v29 }
  0x22   :  { %349 = vmatpush3.bf16.msra.mxu0 %v348_v32 }
  0x23   :  { %381 = vmatpush3.bf16.msra.mxu1 %v380_v33 }
  0x25   :  { %153 = vmatmul.mubr.f32.vlgmr.msra.gmra.mrb[0].mxu0 %v20_v34 }
  0x26   :  { %223 = vmatmul.mubr.f32.vlgmr.msra.gmra.mrb[0].mxu1 %v22_v35 }
  0xf8   :  { %v280_v36 = vpop.f32.mrb[0].mxu0 }
  0xf9   :  { %v315_v37 = vpop.f32.mrb[0].mxu1  ;;  %v281_v38 = vpop.f32.mrb[1].mxu0 }
  0xfa   :  { %v282_v39 = vadd.f32 %v281_v38, %v280_v36  ;;  %v316_v40 = vpop.f32.mrb[1].mxu1 }
  0xfb   :  { %v317_v41 = vadd.f32 %v316_v40, %v315_v37 }
  0xfd   :  { %v225_v43 = vadd.f32 %v317_v41, %v282_v39 }
  0xff   :  { %v241_v44 = vadd.f32 %v247_v42, %v225_v43 }
 0x101   :  { %242 = vst [vmem:[%s615_s3] sm:$0xff] %v241_v44 }

// kernel: forward.6
= control target key start
LH: loop header
LB: loop body
LE: loop exit
PB: predicated region body
PF: predicated region fallthrough
CT: control target
= control target key end

     0   :  { %s1694_s1 = inlined_call_operand.vmem [shape: f32[512,512], index: 1, kind: input, shape index: {}]   ;;  %s1695_s0 = inlined_call_operand.vmem [shape: f32[8,512], index: 0, kind: input, shape index: {}]   ;;  %s1696_s2 = inlined_call_operand.vmem [shape: f32[1,512], index: 2, kind: input, shape index: {}]   ;;  %s1697_s3 = inlined_call_operand.vmem [shape: f32[8,512], index: 3, kind: output, shape index: {}]  }
   0x1   :  { %v31_v0 = vld [vmem:[%s1694_s1 + $0x8] sm:$0xff]  ;;  %v33_v2 = vld [vmem:[%s1694_s1 + $0x18] sm:$0xff]  ;;  %v30_v5 = vld [vmem:[%s1694_s1] sm:$0xff] }
   0x2   :  { %v35_v1 = vld [vmem:[%s1694_s1 + $0x28] sm:$0xff]  ;;  %v37_v4 = vld [vmem:[%s1694_s1 + $0x38] sm:$0xff]  ;;  %v34_v6 = vld [vmem:[%s1694_s1 + $0x20] sm:$0xff] }
   0x3   :  { %v619_v3 = vpack.c.bf16 %v35_v1, %v31_v0  ;;  %v747_v7 = vpack.c.bf16 %v37_v4, %v33_v2  ;;  %v621_v8 = vpack.c.bf16 %v34_v6, %v30_v5  ;;  %v32_v9 = vld [vmem:[%s1694_s1 + $0x10] sm:$0xff]  ;;  %v39_v11 = vld [vmem:[%s1694_s1 + $0x48] sm:$0xff]  ;;  %v41_v14 = vld [vmem:[%s1694_s1 + $0x58] sm:$0xff] }
   0x4   :  { %v36_v10 = vld [vmem:[%s1694_s1 + $0x30] sm:$0xff]  ;;  %v43_v13 = vld [vmem:[%s1694_s1 + $0x68] sm:$0xff]  ;;  %v45_v15 = vld [vmem:[%s1694_s1 + $0x78] sm:$0xff] }
   0x5   :  { %620 = vmatprep.subr.bf16.mxu0 %v619_v3  ;;  %v749_v12 = vpack.c.bf16 %v36_v10, %v32_v9  ;;  %748 = vmatprep.subr.bf16.mxu1 %v747_v7  ;;  %v623_v16 = vpack.c.bf16 %v43_v13, %v39_v11  ;;  %v751_v17 = vpack.c.bf16 %v45_v15, %v41_v14  ;;  %v38_v18 = vld [vmem:[%s1694_s1 + $0x40] sm:$0xff]  ;;  %v40_v20 = vld [vmem:[%s1694_s1 + $0x50] sm:$0xff]  ;;  %v47_v23 = vld [vmem:[%s1694_s1 + $0x88] sm:$0xff] }
   0x6   :  { %622 = vmatpush1.bf16.msra.mxu0 %v621_v8  ;;  %v42_v19 = vld [vmem:[%s1694_s1 + $0x60] sm:$0xff]  ;;  %v44_v22 = vld [vmem:[%s1694_s1 + $0x70] sm:$0xff]  ;;  %v51_v24 = vld [vmem:[%s1694_s1 + $0xa8] sm:$0xff] }
   0x7   :  { %750 = vmatpush1.bf16.msra.mxu1 %v749_v12  ;;  %v625_v21 = vpack.c.bf16 %v42_v19, %v38_v18  ;;  %624 = vmatprep.subr.bf16.mxu0 %v623_v16  ;;  %v753_v25 = vpack.c.bf16 %v44_v22, %v40_v20  ;;  %v627_v26 = vpack.c.bf16 %v51_v24, %v47_v23  ;;  %v49_v27 = vld [vmem:[%s1694_s1 + $0x98] sm:$0xff]  ;;  %v46_v29 = vld [vmem:[%s1694_s1 + $0x80] sm:$0xff]  ;;  %v48_v32 = vld [vmem:[%s1694_s1 + $0x90] sm:$0xff] }
   0x8   :  { %752 = vmatprep.subr.bf16.mxu1 %v751_v17  ;;  %v53_v28 = vld [vmem:[%s1694_s1 + $0xb8] sm:$0xff]  ;;  %v50_v31 = vld [vmem:[%s1694_s1 + $0xa0] sm:$0xff]  ;;  %v52_v33 = vld [vmem:[%s1694_s1 + $0xb0] sm:$0xff] }
   0x9   :  { %v755_v30 = vpack.c.bf16 %v53_v28, %v49_v27  ;;  %v629_v34 = vpack.c.bf16 %v50_v31, %v46_v29  ;;  %v55_v35 = vld [vmem:[%s1694_s1 + $0xc8] sm:$0xff]  ;;  %v57_v37 = vld [vmem:[%s1694_s1 + $0xd8] sm:$0xff]  ;;  %v757_v38 = vpack.c.bf16 %v52_v33, %v48_v32  ;;  %v54_v41 = vld [vmem:[%s1694_s1 + $0xc0] sm:$0xff] }
   0xa   :  { %626 = vmatpush1.bf16.msra.mxu0 %v625_v21  ;;  %v59_v36 = vld [vmem:[%s1694_s1 + $0xe8] sm:$0xff]  ;;  %v61_v40 = vld [vmem:[%s1694_s1 + $0xf8] sm:$0xff]  ;;  %v58_v42 = vld [vmem:[%s1694_s1 + $0xe0] sm:$0xff] }
   0xb   :  { %754 = vmatpush1.bf16.msra.mxu1 %v753_v25  ;;  %628 = vmatprep.subr.bf16.mxu0 %v627_v26  ;;  %v631_v39 = vpack.c.bf16 %v59_v36, %v55_v35  ;;  %v759_v43 = vpack.c.bf16 %v61_v40, %v57_v37  ;;  %v56_v44 = vld [vmem:[%s1694_s1 + $0xd0] sm:$0xff]  ;;  %v63_v46 = vld [vmem:[%s1694_s1 + $0x108] sm:$0xff]  ;;  %v65_v48 = vld [vmem:[%s1694_s1 + $0x118] sm:$0xff]  ;;  %v633_v50 = vpack.c.bf16 %v58_v42, %v54_v41 }
   0xc   :  { %756 = vmatprep.subr.bf16.mxu1 %v755_v30  ;;  %v60_v45 = vld [vmem:[%s1694_s1 + $0xf0] sm:$0xff]  ;;  %v67_v47 = vld [vmem:[%s1694_s1 + $0x128] sm:$0xff]  ;;  %v69_v49 = vld [vmem:[%s1694_s1 + $0x138] sm:$0xff] }
   0xd   :  { %v761_v51 = vpack.c.bf16 %v60_v45, %v56_v44  ;;  %v635_v52 = vpack.c.bf16 %v67_v47, %v63_v46  ;;  %v62_v53 = vld [vmem:[%s1694_s1 + $0x100] sm:$0xff]  ;;  %v64_v55 = vld [vmem:[%s1694_s1 + $0x110] sm:$0xff]  ;;  %v763_v56 = vpack.c.bf16 %v69_v49, %v65_v48  ;;  %v71_v58 = vld [vmem:[%s1694_s1 + $0x148] sm:$0xff] }
   0xe   :  { %630 = vmatpush1.bf16.msra.mxu0 %v629_v34  ;;  %v66_v54 = vld [vmem:[%s1694_s1 + $0x120] sm:$0xff]  ;;  %v68_v57 = vld [vmem:[%s1694_s1 + $0x130] sm:$0xff]  ;;  %v75_v59 = vld [vmem:[%s1694_s1 + $0x168] sm:$0xff] }
   0xf   :  { %758 = vmatpush1.bf16.msra.mxu1 %v757_v38  ;;  %632 = vmatprep.subr.bf16.mxu0 %v631_v39  ;;  %v73_v60 = vld [vmem:[%s1694_s1 + $0x158] sm:$0xff]  ;;  %v637_v62 = vpack.c.bf16 %v66_v54, %v62_v53  ;;  %v765_v63 = vpack.c.bf16 %v68_v57, %v64_v55  ;;  %v639_v0 = vpack.c.bf16 %v75_v59, %v71_v58  ;;  %v70_v1 = vld [vmem:[%s1694_s1 + $0x140] sm:$0xff]  ;;  %v72_v3 = vld [vmem:[%s1694_s1 + $0x150] sm:$0xff] }
  0x10   :  { %760 = vmatprep.subr.bf16.mxu1 %v759_v43  ;;  %v77_v61 = vld [vmem:[%s1694_s1 + $0x178] sm:$0xff]  ;;  %v74_v2 = vld [vmem:[%s1694_s1 + $0x160] sm:$0xff]  ;;  %v76_v5 = vld [vmem:[%s1694_s1 + $0x170] sm:$0xff] }
  0x11   :  { %v767_v4 = vpack.c.bf16 %v77_v61, %v73_v60  ;;  %v79_v6 = vld [vmem:[%s1694_s1 + $0x188] sm:$0xff]  ;;  %v81_v8 = vld [vmem:[%s1694_s1 + $0x198] sm:$0xff]  ;;  %v641_v10 = vpack.c.bf16 %v74_v2, %v70_v1  ;;  %v769_v11 = vpack.c.bf16 %v76_v5, %v72_v3  ;;  %v78_v13 = vld [vmem:[%s1694_s1 + $0x180] sm:$0xff] }
  0x12   :  { %634 = vmatpush1.bf16.msra.mxu0 %v633_v50  ;;  %v83_v7 = vld [vmem:[%s1694_s1 + $0x1a8] sm:$0xff]  ;;  %v85_v9 = vld [vmem:[%s1694_s1 + $0x1b8] sm:$0xff]  ;;  %v82_v14 = vld [vmem:[%s1694_s1 + $0x1a0] sm:$0xff] }
  0x13   :  { %762 = vmatpush1.bf16.msra.mxu1 %v761_v51  ;;  %636 = vmatprep.subr.bf16.mxu0 %v635_v52  ;;  %v643_v12 = vpack.c.bf16 %v83_v7, %v79_v6  ;;  %v80_v15 = vld [vmem:[%s1694_s1 + $0x190] sm:$0xff]  ;;  %v771_v16 = vpack.c.bf16 %v85_v9, %v81_v8  ;;  %v87_v18 = vld [vmem:[%s1694_s1 + $0x1c8] sm:$0xff]  ;;  %v89_v20 = vld [vmem:[%s1694_s1 + $0x1d8] sm:$0xff]  ;;  %v645_v22 = vpack.c.bf16 %v82_v14, %v78_v13 }
  0x14   :  { %764 = vmatprep.subr.bf16.mxu1 %v763_v56  ;;  %v84_v17 = vld [vmem:[%s1694_s1 + $0x1b0] sm:$0xff]  ;;  %v91_v19 = vld [vmem:[%s1694_s1 + $0x1e8] sm:$0xff]  ;;  %v93_v21 = vld [vmem:[%s1694_s1 + $0x1f8] sm:$0xff] }
  0x15   :  { %v773_v23 = vpack.c.bf16 %v84_v17, %v80_v15  ;;  %v647_v24 = vpack.c.bf16 %v91_v19, %v87_v18  ;;  %v86_v25 = vld [vmem:[%s1694_s1 + $0x1c0] sm:$0xff]  ;;  %v88_v27 = vld [vmem:[%s1694_s1 + $0x1d0] sm:$0xff]  ;;  %v775_v28 = vpack.c.bf16 %v93_v21, %v89_v20  ;;  %v95_v30 = vld [vmem:[%s1694_s1 + $0x208] sm:$0xff] }
  0x16   :  { %638 = vmatpush1.bf16.msra.mxu0 %v637_v62  ;;  %v90_v26 = vld [vmem:[%s1694_s1 + $0x1e0] sm:$0xff]  ;;  %v92_v29 = vld [vmem:[%s1694_s1 + $0x1f0] sm:$0xff]  ;;  %v99_v31 = vld [vmem:[%s1694_s1 + $0x228] sm:$0xff] }
  0x17   :  { %766 = vmatpush1.bf16.msra.mxu1 %v765_v63  ;;  %640 = vmatprep.subr.bf16.mxu0 %v639_v0  ;;  %v97_v32 = vld [vmem:[%s1694_s1 + $0x218] sm:$0xff]  ;;  %v649_v34 = vpack.c.bf16 %v90_v26, %v86_v25  ;;  %v777_v35 = vpack.c.bf16 %v92_v29, %v88_v27  ;;  %v651_v36 = vpack.c.bf16 %v99_v31, %v95_v30  ;;  %v94_v37 = vld [vmem:[%s1694_s1 + $0x200] sm:$0xff]  ;;  %v96_v39 = vld [vmem:[%s1694_s1 + $0x210] sm:$0xff] }
  0x18   :  { %768 = vmatprep.subr.bf16.mxu1 %v767_v4  ;;  %v101_v33 = vld [vmem:[%s1694_s1 + $0x238] sm:$0xff]  ;;  %v98_v38 = vld [vmem:[%s1694_s1 + $0x220] sm:$0xff]  ;;  %v100_v41 = vld [vmem:[%s1694_s1 + $0x230] sm:$0xff] }
  0x19   :  { %v779_v40 = vpack.c.bf16 %v101_v33, %v97_v32  ;;  %v103_v42 = vld [vmem:[%s1694_s1 + $0x248] sm:$0xff]  ;;  %v105_v44 = vld [vmem:[%s1694_s1 + $0x258] sm:$0xff]  ;;  %v653_v46 = vpack.c.bf16 %v98_v38, %v94_v37  ;;  %v781_v47 = vpack.c.bf16 %v100_v41, %v96_v39  ;;  %v102_v49 = vld [vmem:[%s1694_s1 + $0x240] sm:$0xff] }
  0x1a   :  { %642 = vmatpush1.bf16.msra.mxu0 %v641_v10  ;;  %v107_v43 = vld [vmem:[%s1694_s1 + $0x268] sm:$0xff]  ;;  %v109_v45 = vld [vmem:[%s1694_s1 + $0x278] sm:$0xff]  ;;  %v106_v50 = vld [vmem:[%s1694_s1 + $0x260] sm:$0xff] }
  0x1b   :  { %770 = vmatpush1.bf16.msra.mxu1 %v769_v11  ;;  %644 = vmatprep.subr.bf16.mxu0 %v643_v12  ;;  %v655_v48 = vpack.c.bf16 %v107_v43, %v103_v42  ;;  %v104_v51 = vld [vmem:[%s1694_s1 + $0x250] sm:$0xff]  ;;  %v783_v52 = vpack.c.bf16 %v109_v45, %v105_v44  ;;  %v111_v54 = vld [vmem:[%s1694_s1 + $0x288] sm:$0xff]  ;;  %v113_v56 = vld [vmem:[%s1694_s1 + $0x298] sm:$0xff]  ;;  %v657_v58 = vpack.c.bf16 %v106_v50, %v102_v49 }
  0x1c   :  { %772 = vmatprep.subr.bf16.mxu1 %v771_v16  ;;  %v108_v53 = vld [vmem:[%s1694_s1 + $0x270] sm:$0xff]  ;;  %v115_v55 = vld [vmem:[%s1694_s1 + $0x2a8] sm:$0xff]  ;;  %v117_v57 = vld [vmem:[%s1694_s1 + $0x2b8] sm:$0xff] }
  0x1d   :  { %v785_v59 = vpack.c.bf16 %v108_v53, %v104_v51  ;;  %v659_v60 = vpack.c.bf16 %v115_v55, %v111_v54  ;;  %v110_v61 = vld [vmem:[%s1694_s1 + $0x280] sm:$0xff]  ;;  %v112_v63 = vld [vmem:[%s1694_s1 + $0x290] sm:$0xff]  ;;  %v787_v0 = vpack.c.bf16 %v117_v57, %v113_v56  ;;  %v119_v2 = vld [vmem:[%s1694_s1 + $0x2c8] sm:$0xff] }
  0x1e   :  { %646 = vmatpush1.bf16.msra.mxu0 %v645_v22  ;;  %v114_v62 = vld [vmem:[%s1694_s1 + $0x2a0] sm:$0xff]  ;;  %v116_v1 = vld [vmem:[%s1694_s1 + $0x2b0] sm:$0xff]  ;;  %v123_v3 = vld [vmem:[%s1694_s1 + $0x2e8] sm:$0xff] }
  0x1f   :  { %774 = vmatpush1.bf16.msra.mxu1 %v773_v23  ;;  %648 = vmatprep.subr.bf16.mxu0 %v647_v24  ;;  %v121_v4 = vld [vmem:[%s1694_s1 + $0x2d8] sm:$0xff]  ;;  %v661_v6 = vpack.c.bf16 %v114_v62, %v110_v61  ;;  %v118_v7 = vld [vmem:[%s1694_s1 + $0x2c0] sm:$0xff]  ;;  %v789_v8 = vpack.c.bf16 %v116_v1, %v112_v63  ;;  %v663_v9 = vpack.c.bf16 %v123_v3, %v119_v2  ;;  %v120_v11 = vld [vmem:[%s1694_s1 + $0x2d0] sm:$0xff] }
  0x20   :  { %776 = vmatprep.subr.bf16.mxu1 %v775_v28  ;;  %v125_v5 = vld [vmem:[%s1694_s1 + $0x2f8] sm:$0xff]  ;;  %v122_v10 = vld [vmem:[%s1694_s1 + $0x2e0] sm:$0xff]  ;;  %v124_v12 = vld [vmem:[%s1694_s1 + $0x2f0] sm:$0xff] }
  0x21   :  { %v791_v13 = vpack.c.bf16 %v125_v5, %v121_v4  ;;  %v127_v14 = vld [vmem:[%s1694_s1 + $0x308] sm:$0xff]  ;;  %v129_v17 = vld [vmem:[%s1694_s1 + $0x318] sm:$0xff]  ;;  %v665_v19 = vpack.c.bf16 %v122_v10, %v118_v7  ;;  %v793_v20 = vpack.c.bf16 %v124_v12, %v120_v11  ;;  %v126_v22 = vld [vmem:[%s1694_s1 + $0x300] sm:$0xff] }
  0x22   :  { %650 = vmatpush1.bf16.msra.mxu0 %v649_v34  ;;  %v131_v15 = vld [vmem:[%s1694_s1 + $0x328] sm:$0xff]  ;;  %v133_v18 = vld [vmem:[%s1694_s1 + $0x338] sm:$0xff]  ;;  %v130_v23 = vld [vmem:[%s1694_s1 + $0x320] sm:$0xff] }
  0x23   :  { %778 = vmatpush1.bf16.msra.mxu1 %v777_v35  ;;  %652 = vmatprep.subr.bf16.mxu0 %v651_v36  ;;  %v27_v16 = vld [vmem:[%s1695_s0 + $0x8] sm:$0xff]  ;;  %v667_v21 = vpack.c.bf16 %v131_v15, %v127_v14  ;;  %v128_v24 = vld [vmem:[%s1694_s1 + $0x310] sm:$0xff]  ;;  %v795_v25 = vpack.c.bf16 %v133_v18, %v129_v17  ;;  %v137_v29 = vld [vmem:[%s1694_s1 + $0x358] sm:$0xff]  ;;  %v669_v31 = vpack.c.bf16 %v130_v23, %v126_v22 }
  0x24   :  { %780 = vmatprep.subr.bf16.mxu1 %v779_v40  ;;  %350 = vmatprep.mubr.f32.mxu0 %v27_v16  ;;  %v132_v26 = vld [vmem:[%s1694_s1 + $0x330] sm:$0xff]  ;;  %v135_v27 = vld [vmem:[%s1694_s1 + $0x348] sm:$0xff]  ;;  %v141_v30 = vld [vmem:[%s1694_s1 + $0x378] sm:$0xff] }
  0x25   :  { %492 = vmatprep.mubr.f32.mxu1 %v27_v16  ;;  %v139_v28 = vld [vmem:[%s1694_s1 + $0x368] sm:$0xff]  ;;  %v797_v32 = vpack.c.bf16 %v132_v26, %v128_v24  ;;  %v134_v34 = vld [vmem:[%s1694_s1 + $0x340] sm:$0xff]  ;;  %v136_v36 = vld [vmem:[%s1694_s1 + $0x350] sm:$0xff]  ;;  %v799_v37 = vpack.c.bf16 %v141_v30, %v137_v29 }
  0x26   :  { %654 = vmatpush1.bf16.msra.mxu0 %v653_v46  ;;  %v671_v33 = vpack.c.bf16 %v139_v28, %v135_v27  ;;  %v138_v35 = vld [vmem:[%s1694_s1 + $0x360] sm:$0xff]  ;;  %v140_v38 = vld [vmem:[%s1694_s1 + $0x370] sm:$0xff]  ;;  %v143_v39 = vld [vmem:[%s1694_s1 + $0x388] sm:$0xff] }
  0x27   :  { %782 = vmatpush1.bf16.msra.mxu1 %v781_v47  ;;  %656 = vmatprep.subr.bf16.mxu0 %v655_v48  ;;  %v147_v40 = vld [vmem:[%s1694_s1 + $0x3a8] sm:$0xff]  ;;  %v145_v41 = vld [vmem:[%s1694_s1 + $0x398] sm:$0xff]  ;;  %v673_v43 = vpack.c.bf16 %v138_v35, %v134_v34  ;;  %v801_v44 = vpack.c.bf16 %v140_v38, %v136_v36  ;;  %v142_v46 = vld [vmem:[%s1694_s1 + $0x380] sm:$0xff] }
  0x28   :  { %784 = vmatprep.subr.bf16.mxu1 %v783_v52  ;;  %v149_v42 = vld [vmem:[%s1694_s1 + $0x3b8] sm:$0xff]  ;;  %v675_v45 = vpack.c.bf16 %v147_v40, %v143_v39  ;;  %v146_v47 = vld [vmem:[%s1694_s1 + $0x3a0] sm:$0xff]  ;;  %v144_v48 = vld [vmem:[%s1694_s1 + $0x390] sm:$0xff] }
  0x29   :  { %v803_v49 = vpack.c.bf16 %v149_v42, %v145_v41  ;;  %v148_v50 = vld [vmem:[%s1694_s1 + $0x3b0] sm:$0xff]  ;;  %v151_v51 = vld [vmem:[%s1694_s1 + $0x3c8] sm:$0xff]  ;;  %v153_v53 = vld [vmem:[%s1694_s1 + $0x3d8] sm:$0xff]  ;;  %v677_v55 = vpack.c.bf16 %v146_v47, %v142_v46 }
  0x2a   :  { %658 = vmatpush1.bf16.msra.mxu0 %v657_v58  ;;  %v155_v52 = vld [vmem:[%s1694_s1 + $0x3e8] sm:$0xff]  ;;  %v157_v54 = vld [vmem:[%s1694_s1 + $0x3f8] sm:$0xff]  ;;  %v805_v56 = vpack.c.bf16 %v148_v50, %v144_v48  ;;  %v150_v58 = vld [vmem:[%s1694_s1 + $0x3c0] sm:$0xff] }
  0x2b   :  { %786 = vmatpush1.bf16.msra.mxu1 %v785_v59  ;;  %660 = vmatprep.subr.bf16.mxu0 %v659_v60  ;;  %v679_v57 = vpack.c.bf16 %v155_v52, %v151_v51  ;;  %v154_v59 = vld [vmem:[%s1694_s1 + $0x3e0] sm:$0xff]  ;;  %v152_v60 = vld [vmem:[%s1694_s1 + $0x3d0] sm:$0xff]  ;;  %v807_v61 = vpack.c.bf16 %v157_v54, %v153_v53  ;;  %v159_v63 = vld [vmem:[%s1694_s1 + $0x408] sm:$0xff] }
  0x2c   :  { %788 = vmatprep.subr.bf16.mxu1 %v787_v0  ;;  %v156_v62 = vld [vmem:[%s1694_s1 + $0x3f0] sm:$0xff]  ;;  %v163_v0 = vld [vmem:[%s1694_s1 + $0x428] sm:$0xff]  ;;  %v161_v1 = vld [vmem:[%s1694_s1 + $0x418] sm:$0xff]  ;;  %v681_v3 = vpack.c.bf16 %v154_v59, %v150_v58 }
  0x2d   :  { %v165_v2 = vld [vmem:[%s1694_s1 + $0x438] sm:$0xff]  ;;  %v809_v4 = vpack.c.bf16 %v156_v62, %v152_v60  ;;  %v683_v5 = vpack.c.bf16 %v163_v0, %v159_v63  ;;  %v162_v7 = vld [vmem:[%s1694_s1 + $0x420] sm:$0xff]  ;;  %v164_v10 = vld [vmem:[%s1694_s1 + $0x430] sm:$0xff] }
  0x2e   :  { %662 = vmatpush1.bf16.msra.mxu0 %v661_v6  ;;  %v158_v6 = vld [vmem:[%s1694_s1 + $0x400] sm:$0xff]  ;;  %v167_v11 = vld [vmem:[%s1694_s1 + $0x448] sm:$0xff]  ;;  %v173_v14 = vld [vmem:[%s1694_s1 + $0x478] sm:$0xff] }
  0x2f   :  { %790 = vmatpush1.bf16.msra.mxu1 %v789_v8  ;;  %664 = vmatprep.subr.bf16.mxu0 %v663_v9  ;;  %v160_v8 = vld [vmem:[%s1694_s1 + $0x410] sm:$0xff]  ;;  %v811_v9 = vpack.c.bf16 %v165_v2, %v161_v1  ;;  %v171_v12 = vld [vmem:[%s1694_s1 + $0x468] sm:$0xff]  ;;  %v26_v15 = vld [vmem:[%s1695_s0] sm:$0xff]  ;;  %v685_v16 = vpack.c.bf16 %v162_v7, %v158_v6 }
  0x30   :  { %792 = vmatprep.subr.bf16.mxu1 %v791_v13  ;;  %v169_v13 = vld [vmem:[%s1694_s1 + $0x458] sm:$0xff]  ;;  %v813_v17 = vpack.c.bf16 %v164_v10, %v160_v8  ;;  %v687_v18 = vpack.c.bf16 %v171_v12, %v167_v11  ;;  %v172_v23 = vld [vmem:[%s1694_s1 + $0x470] sm:$0xff]  ;;  %v175_v24 = vld [vmem:[%s1694_s1 + $0x488] sm:$0xff] }
  0x31   :  { %v815_v22 = vpack.c.bf16 %v173_v14, %v169_v13  ;;  %v177_v26 = vld [vmem:[%s1694_s1 + $0x498] sm:$0xff]  ;;  %v180_v35 = vld [vmem:[%s1694_s1 + $0x4b0] sm:$0xff]  ;;  %v183_v36 = vld [vmem:[%s1694_s1 + $0x4c8] sm:$0xff] }
  0x32   :  { %666 = vmatpush1.bf16.msra.mxu0 %v665_v19  ;;  %v166_v19 = vld [vmem:[%s1694_s1 + $0x440] sm:$0xff]  ;;  %v181_v27 = vld [vmem:[%s1694_s1 + $0x4b8] sm:$0xff]  ;;  %v188_v47 = vld [vmem:[%s1694_s1 + $0x4f0] sm:$0xff] }
  0x33   :  { %794 = vmatpush1.bf16.msra.mxu1 %v793_v20  ;;  %668 = vmatprep.subr.bf16.mxu0 %v667_v21  ;;  %v170_v20 = vld [vmem:[%s1694_s1 + $0x460] sm:$0xff]  ;;  %v168_v21 = vld [vmem:[%s1694_s1 + $0x450] sm:$0xff]  ;;  %v819_v34 = vpack.c.bf16 %v181_v27, %v177_v26  ;;  %v185_v38 = vld [vmem:[%s1694_s1 + $0x4d8] sm:$0xff] }
  0x34   :  { %796 = vmatprep.subr.bf16.mxu1 %v795_v25  ;;  %v179_v25 = vld [vmem:[%s1694_s1 + $0x4a8] sm:$0xff]  ;;  %v689_v28 = vpack.c.bf16 %v170_v20, %v166_v19  ;;  %v817_v29 = vpack.c.bf16 %v172_v23, %v168_v21  ;;  %v189_v39 = vld [vmem:[%s1694_s1 + $0x4f8] sm:$0xff]  ;;  %v196_v59 = vld [vmem:[%s1694_s1 + $0x530] sm:$0xff] }
  0x35   :  { %v691_v30 = vpack.c.bf16 %v179_v25, %v175_v24  ;;  %v823_v46 = vpack.c.bf16 %v189_v39, %v185_v38  ;;  %v191_v48 = vld [vmem:[%s1694_s1 + $0x508] sm:$0xff]  ;;  %v193_v50 = vld [vmem:[%s1694_s1 + $0x518] sm:$0xff]  ;;  %v204_v7 = vld [vmem:[%s1694_s1 + $0x570] sm:$0xff] }
  0x36   :  { %670 = vmatpush1.bf16.msra.mxu0 %v669_v31  ;;  %v174_v31 = vld [vmem:[%s1694_s1 + $0x480] sm:$0xff]  ;;  %v197_v51 = vld [vmem:[%s1694_s1 + $0x538] sm:$0xff]  ;;  %v199_v60 = vld [vmem:[%s1694_s1 + $0x548] sm:$0xff] }
  0x37   :  { %798 = vmatpush1.bf16.msra.mxu1 %v797_v32  ;;  %672 = vmatprep.subr.bf16.mxu0 %v671_v33  ;;  %v178_v32 = vld [vmem:[%s1694_s1 + $0x4a0] sm:$0xff]  ;;  %v176_v33 = vld [vmem:[%s1694_s1 + $0x490] sm:$0xff]  ;;  %v827_v58 = vpack.c.bf16 %v197_v51, %v193_v50  ;;  %v201_v62 = vld [vmem:[%s1694_s1 + $0x558] sm:$0xff] }
  0x38   :  { %800 = vmatprep.subr.bf16.mxu1 %v799_v37  ;;  %v187_v37 = vld [vmem:[%s1694_s1 + $0x4e8] sm:$0xff]  ;;  %v693_v40 = vpack.c.bf16 %v178_v32, %v174_v31  ;;  %v821_v41 = vpack.c.bf16 %v180_v35, %v176_v33  ;;  %v205_v63 = vld [vmem:[%s1694_s1 + $0x578] sm:$0xff]  ;;  %v206_v13 = vld [vmem:[%s1694_s1 + $0x580] sm:$0xff] }
  0x39   :  { %v695_v42 = vpack.c.bf16 %v187_v37, %v183_v36  ;;  %v831_v6 = vpack.c.bf16 %v205_v63, %v201_v62  ;;  %v207_v8 = vld [vmem:[%s1694_s1 + $0x588] sm:$0xff]  ;;  %v209_v10 = vld [vmem:[%s1694_s1 + $0x598] sm:$0xff]  ;;  %v220_v32 = vld [vmem:[%s1694_s1 + $0x5f0] sm:$0xff] }
  0x3a   :  { %674 = vmatpush1.bf16.msra.mxu0 %v673_v43  ;;  %v182_v43 = vld [vmem:[%s1694_s1 + $0x4c0] sm:$0xff]  ;;  %v213_v11 = vld [vmem:[%s1694_s1 + $0x5b8] sm:$0xff]  ;;  %v215_v20 = vld [vmem:[%s1694_s1 + $0x5c8] sm:$0xff] }
  0x3b   :  { %802 = vmatpush1.bf16.msra.mxu1 %v801_v44  ;;  %676 = vmatprep.subr.bf16.mxu0 %v675_v45  ;;  %v186_v44 = vld [vmem:[%s1694_s1 + $0x4e0] sm:$0xff]  ;;  %v184_v45 = vld [vmem:[%s1694_s1 + $0x4d0] sm:$0xff]  ;;  %v835_v19 = vpack.c.bf16 %v213_v11, %v209_v10  ;;  %v219_v21 = vld [vmem:[%s1694_s1 + $0x5e8] sm:$0xff] }
  0x3c   :  { %804 = vmatprep.subr.bf16.mxu1 %v803_v49  ;;  %v195_v49 = vld [vmem:[%s1694_s1 + $0x528] sm:$0xff]  ;;  %v697_v52 = vpack.c.bf16 %v186_v44, %v182_v43  ;;  %v825_v53 = vpack.c.bf16 %v188_v47, %v184_v45  ;;  %v217_v23 = vld [vmem:[%s1694_s1 + $0x5d8] sm:$0xff]  ;;  %v711_v27 = vpack.c.bf16 %v219_v21, %v215_v20  ;;  %v228_v44 = vld [vmem:[%s1694_s1 + $0x630] sm:$0xff] }
  0x3d   :  { %v699_v54 = vpack.c.bf16 %v195_v49, %v191_v48  ;;  %v221_v24 = vld [vmem:[%s1694_s1 + $0x5f8] sm:$0xff]  ;;  %v223_v33 = vld [vmem:[%s1694_s1 + $0x608] sm:$0xff] }
  0x3e   :  { %678 = vmatpush1.bf16.msra.mxu0 %v677_v55  ;;  %v190_v55 = vld [vmem:[%s1694_s1 + $0x500] sm:$0xff]  ;;  %v839_v31 = vpack.c.bf16 %v221_v24, %v217_v23  ;;  %v225_v35 = vld [vmem:[%s1694_s1 + $0x618] sm:$0xff]  ;;  %v231_v45 = vld [vmem:[%s1694_s1 + $0x648] sm:$0xff] }
  0x3f   :  { %806 = vmatpush1.bf16.msra.mxu1 %v805_v56  ;;  %680 = vmatprep.subr.bf16.mxu0 %v679_v57  ;;  %v194_v56 = vld [vmem:[%s1694_s1 + $0x520] sm:$0xff]  ;;  %v192_v57 = vld [vmem:[%s1694_s1 + $0x510] sm:$0xff]  ;;  %v229_v36 = vld [vmem:[%s1694_s1 + $0x638] sm:$0xff] }
  0x40   :  { %808 = vmatprep.subr.bf16.mxu1 %v807_v61  ;;  %v203_v61 = vld [vmem:[%s1694_s1 + $0x568] sm:$0xff]  ;;  %v701_v0 = vpack.c.bf16 %v194_v56, %v190_v55  ;;  %v829_v1 = vpack.c.bf16 %v196_v59, %v192_v57  ;;  %v843_v43 = vpack.c.bf16 %v229_v36, %v225_v35  ;;  %v233_v47 = vld [vmem:[%s1694_s1 + $0x658] sm:$0xff]  ;;  %v236_v56 = vld [vmem:[%s1694_s1 + $0x670] sm:$0xff] }
  0x41   :  { %v703_v2 = vpack.c.bf16 %v203_v61, %v199_v60  ;;  %v237_v48 = vld [vmem:[%s1694_s1 + $0x678] sm:$0xff]  ;;  %v239_v57 = vld [vmem:[%s1694_s1 + $0x688] sm:$0xff]  ;;  %v254_v24 = vld [vmem:[%s1694_s1 + $0x700] sm:$0xff] }
  0x42   :  { %682 = vmatpush1.bf16.msra.mxu0 %v681_v3  ;;  %v198_v3 = vld [vmem:[%s1694_s1 + $0x540] sm:$0xff]  ;;  %v847_v55 = vpack.c.bf16 %v237_v48, %v233_v47  ;;  %v241_v59 = vld [vmem:[%s1694_s1 + $0x698] sm:$0xff] }
  0x43   :  { %810 = vmatpush1.bf16.msra.mxu1 %v809_v4  ;;  %684 = vmatprep.subr.bf16.mxu0 %v683_v5  ;;  %v202_v4 = vld [vmem:[%s1694_s1 + $0x560] sm:$0xff]  ;;  %v200_v5 = vld [vmem:[%s1694_s1 + $0x550] sm:$0xff]  ;;  %v245_v60 = vld [vmem:[%s1694_s1 + $0x6b8] sm:$0xff] }
  0x44   :  { %812 = vmatprep.subr.bf16.mxu1 %v811_v9  ;;  %v211_v9 = vld [vmem:[%s1694_s1 + $0x5a8] sm:$0xff]  ;;  %v705_v12 = vpack.c.bf16 %v202_v4, %v198_v3  ;;  %v833_v14 = vpack.c.bf16 %v204_v7, %v200_v5  ;;  %v851_v3 = vpack.c.bf16 %v245_v60, %v241_v59  ;;  %v244_v4 = vld [vmem:[%s1694_s1 + $0x6b0] sm:$0xff]  ;;  %v249_v7 = vld [vmem:[%s1694_s1 + $0x6d8] sm:$0xff] }
  0x45   :  { %351 = vmatmul.mubr.f32.vlgmr.msra.gmra.mrb[0].mxu0 %v26_v15  ;;  %v247_v5 = vld [vmem:[%s1694_s1 + $0x6c8] sm:$0xff]  ;;  %v261_v20 = vld [vmem:[%s1694_s1 + $0x738] sm:$0xff]  ;;  %v262_v36 = vld [vmem:[%s1694_s1 + $0x740] sm:$0xff] }
  0x46   :  { %686 = vmatpush1.bf16.msra.mxu0 %v685_v16  ;;  %493 = vmatmul.mubr.f32.vlgmr.msra.gmra.mrb[0].mxu1 %v26_v15  ;;  %v707_v15 = vpack.c.bf16 %v211_v9, %v207_v8  ;;  %v210_v16 = vld [vmem:[%s1694_s1 + $0x5a0] sm:$0xff]  ;;  %v253_v8 = vld [vmem:[%s1694_s1 + $0x6f8] sm:$0xff] }
  0x47   :  { %814 = vmatpush1.bf16.msra.mxu1 %v813_v17  ;;  %688 = vmatprep.subr.bf16.mxu0 %v687_v18  ;;  %v208_v17 = vld [vmem:[%s1694_s1 + $0x590] sm:$0xff]  ;;  %v709_v25 = vpack.c.bf16 %v210_v16, %v206_v13  ;;  %v250_v13 = vld [vmem:[%s1694_s1 + $0x6e0] sm:$0xff] }
  0x48   :  { %816 = vmatprep.subr.bf16.mxu1 %v815_v22  ;;  %v212_v18 = vld [vmem:[%s1694_s1 + $0x5b0] sm:$0xff]  ;;  %v29_v22 = vld [vmem:[%s1695_s0 + $0x18] sm:$0xff]  ;;  %v270_v48 = vld [vmem:[%s1694_s1 + $0x780] sm:$0xff] }
  0x49   :  { %421 = vmatprep.mubr.f32.mxu0 %v29_v22  ;;  %563 = vmatprep.mubr.f32.mxu1 %v29_v22  ;;  %v837_v26 = vpack.c.bf16 %v212_v18, %v208_v17  ;;  %v252_v16 = vld [vmem:[%s1694_s1 + $0x6f0] sm:$0xff]  ;;  %v255_v17 = vld [vmem:[%s1694_s1 + $0x708] sm:$0xff]  ;;  %v278_v60 = vld [vmem:[%s1694_s1 + $0x7c0] sm:$0xff] }
  0x4a   :  { %690 = vmatpush1.bf16.msra.mxu0 %v689_v28  ;;  %v214_v28 = vld [vmem:[%s1694_s1 + $0x5c0] sm:$0xff]  ;;  %v259_v18 = vld [vmem:[%s1694_s1 + $0x728] sm:$0xff] }
  0x4b   :  { %818 = vmatpush1.bf16.msra.mxu1 %v817_v29  ;;  %692 = vmatprep.subr.bf16.mxu0 %v691_v30  ;;  %v218_v29 = vld [vmem:[%s1694_s1 + $0x5e0] sm:$0xff]  ;;  %v216_v30 = vld [vmem:[%s1694_s1 + $0x5d0] sm:$0xff]  ;;  %v731_v23 = vpack.c.bf16 %v259_v18, %v255_v17 }
  0x4c   :  { %820 = vmatprep.subr.bf16.mxu1 %v819_v34  ;;  %v227_v34 = vld [vmem:[%s1694_s1 + $0x628] sm:$0xff]  ;;  %v713_v37 = vpack.c.bf16 %v218_v29, %v214_v28  ;;  %v841_v38 = vpack.c.bf16 %v220_v32, %v216_v30  ;;  %v260_v28 = vld [vmem:[%s1694_s1 + $0x730] sm:$0xff]  ;;  %v269_v32 = vld [vmem:[%s1694_s1 + $0x778] sm:$0xff] }
  0x4d   :  { %v715_v39 = vpack.c.bf16 %v227_v34, %v223_v33  ;;  %v263_v29 = vld [vmem:[%s1694_s1 + $0x748] sm:$0xff] }
  0x4e   :  { %694 = vmatpush1.bf16.msra.mxu0 %v693_v40  ;;  %v222_v40 = vld [vmem:[%s1694_s1 + $0x600] sm:$0xff]  ;;  %v267_v30 = vld [vmem:[%s1694_s1 + $0x768] sm:$0xff] }
  0x4f   :  { %822 = vmatpush1.bf16.msra.mxu1 %v821_v41  ;;  %696 = vmatprep.subr.bf16.mxu0 %v695_v42  ;;  %v226_v41 = vld [vmem:[%s1694_s1 + $0x620] sm:$0xff]  ;;  %v224_v42 = vld [vmem:[%s1694_s1 + $0x610] sm:$0xff]  ;;  %v735_v35 = vpack.c.bf16 %v267_v30, %v263_v29 }
  0x50   :  { %824 = vmatprep.subr.bf16.mxu1 %v823_v46  ;;  %v235_v46 = vld [vmem:[%s1694_s1 + $0x668] sm:$0xff]  ;;  %v717_v49 = vpack.c.bf16 %v226_v41, %v222_v40  ;;  %v845_v50 = vpack.c.bf16 %v228_v44, %v224_v42  ;;  %v268_v40 = vld [vmem:[%s1694_s1 + $0x770] sm:$0xff]  ;;  %v277_v44 = vld [vmem:[%s1694_s1 + $0x7b8] sm:$0xff] }
  0x51   :  { %v719_v51 = vpack.c.bf16 %v235_v46, %v231_v45  ;;  %v271_v41 = vld [vmem:[%s1694_s1 + $0x788] sm:$0xff] }
  0x52   :  { %698 = vmatpush1.bf16.msra.mxu0 %v697_v52  ;;  %v230_v52 = vld [vmem:[%s1694_s1 + $0x640] sm:$0xff]  ;;  %v275_v42 = vld [vmem:[%s1694_s1 + $0x7a8] sm:$0xff] }
  0x53   :  { %826 = vmatpush1.bf16.msra.mxu1 %v825_v53  ;;  %700 = vmatprep.subr.bf16.mxu0 %v699_v54  ;;  %v234_v53 = vld [vmem:[%s1694_s1 + $0x660] sm:$0xff]  ;;  %v232_v54 = vld [vmem:[%s1694_s1 + $0x650] sm:$0xff]  ;;  %v739_v47 = vpack.c.bf16 %v275_v42, %v271_v41 }
  0x54   :  { %828 = vmatprep.subr.bf16.mxu1 %v827_v58  ;;  %v243_v58 = vld [vmem:[%s1694_s1 + $0x6a8] sm:$0xff]  ;;  %v721_v61 = vpack.c.bf16 %v234_v53, %v230_v52  ;;  %v849_v62 = vpack.c.bf16 %v236_v56, %v232_v54  ;;  %v276_v52 = vld [vmem:[%s1694_s1 + $0x7b0] sm:$0xff]  ;;  %v285_v56 = vld [vmem:[%s1694_s1 + $0x7f8] sm:$0xff] }
  0x55   :  { %v723_v63 = vpack.c.bf16 %v243_v58, %v239_v57  ;;  %v279_v53 = vld [vmem:[%s1694_s1 + $0x7c8] sm:$0xff] }
  0x56   :  { %702 = vmatpush1.bf16.msra.mxu0 %v701_v0  ;;  %v238_v0 = vld [vmem:[%s1694_s1 + $0x680] sm:$0xff]  ;;  %v283_v54 = vld [vmem:[%s1694_s1 + $0x7e8] sm:$0xff] }
  0x57   :  { %830 = vmatpush1.bf16.msra.mxu1 %v829_v1  ;;  %704 = vmatprep.subr.bf16.mxu0 %v703_v2  ;;  %v242_v1 = vld [vmem:[%s1694_s1 + $0x6a0] sm:$0xff]  ;;  %v240_v2 = vld [vmem:[%s1694_s1 + $0x690] sm:$0xff]  ;;  %v743_v59 = vpack.c.bf16 %v283_v54, %v279_v53 }
  0x58   :  { %832 = vmatprep.subr.bf16.mxu1 %v831_v6  ;;  %v251_v6 = vld [vmem:[%s1694_s1 + $0x6e8] sm:$0xff]  ;;  %v725_v9 = vpack.c.bf16 %v242_v1, %v238_v0  ;;  %v853_v10 = vpack.c.bf16 %v244_v4, %v240_v2  ;;  %v284_v0 = vld [vmem:[%s1694_s1 + $0x7f0] sm:$0xff]  ;;  %v587_v4 = vlaneseq }
  0x59   :  { %v727_v11 = vpack.c.bf16 %v251_v6, %v247_v5 }
  0x5a   :  { %706 = vmatpush1.bf16.msra.mxu0 %v705_v12  ;;  %v246_v12 = vld [vmem:[%s1694_s1 + $0x6c0] sm:$0xff]  ;;  %v588_v5 = vshrl.u32 %v587_v4, 7 }
  0x5b   :  { %834 = vmatpush1.bf16.msra.mxu1 %v833_v14  ;;  %708 = vmatprep.subr.bf16.mxu0 %v707_v15  ;;  %v248_v14 = vld [vmem:[%s1694_s1 + $0x6d0] sm:$0xff]  ;;  %v855_v15 = vpack.c.bf16 %v253_v8, %v249_v7  ;;  %v729_v21 = vpack.c.bf16 %v250_v13, %v246_v12  ;;  %v585_v7 = vld [vmem:[%s1696_s2] sm:$0xf] }
  0x5c   :  { %836 = vmatprep.subr.bf16.mxu1 %v835_v19  ;;  %v257_v19 = vld [vmem:[%s1694_s1 + $0x718] sm:$0xff]  ;;  %v857_v22 = vpack.c.bf16 %v252_v16, %v248_v14  ;;  %v589_v6 = vsub.s32 0, %v588_v5  ;;  %v597_v8 = vsub.s32 2, %v588_v5 }
  0x5e   :  { %710 = vmatpush1.bf16.msra.mxu0 %v709_v25  ;;  %v258_v25 = vld [vmem:[%s1694_s1 + $0x720] sm:$0xff]  ;;  %v598_v12 = vrot.slane %v585_v7, %v597_v8 }
  0x5f   :  { %838 = vmatpush1.bf16.msra.mxu1 %v837_v26  ;;  %712 = vmatprep.subr.bf16.mxu0 %v711_v27  ;;  %v256_v26 = vld [vmem:[%s1694_s1 + $0x710] sm:$0xff]  ;;  %v859_v27 = vpack.c.bf16 %v261_v20, %v257_v19  ;;  %v733_v33 = vpack.c.bf16 %v258_v25, %v254_v24 }
  0x60   :  { %840 = vmatprep.subr.bf16.mxu1 %v839_v31  ;;  %v265_v31 = vld [vmem:[%s1694_s1 + $0x758] sm:$0xff]  ;;  %v861_v34 = vpack.c.bf16 %v260_v28, %v256_v26 }
  0x62   :  { %714 = vmatpush1.bf16.msra.mxu0 %v713_v37  ;;  %v266_v37 = vld [vmem:[%s1694_s1 + $0x760] sm:$0xff] }
  0x63   :  { %842 = vmatpush1.bf16.msra.mxu1 %v841_v38  ;;  %716 = vmatprep.subr.bf16.mxu0 %v715_v39  ;;  %v264_v38 = vld [vmem:[%s1694_s1 + $0x750] sm:$0xff]  ;;  %v863_v39 = vpack.c.bf16 %v269_v32, %v265_v31  ;;  %v737_v45 = vpack.c.bf16 %v266_v37, %v262_v36 }
  0x64   :  { %844 = vmatprep.subr.bf16.mxu1 %v843_v43  ;;  %v273_v43 = vld [vmem:[%s1694_s1 + $0x798] sm:$0xff]  ;;  %v865_v46 = vpack.c.bf16 %v268_v40, %v264_v38 }
  0x66   :  { %718 = vmatpush1.bf16.msra.mxu0 %v717_v49  ;;  %v274_v49 = vld [vmem:[%s1694_s1 + $0x7a0] sm:$0xff] }
  0x67   :  { %846 = vmatpush1.bf16.msra.mxu1 %v845_v50  ;;  %720 = vmatprep.subr.bf16.mxu0 %v719_v51  ;;  %v272_v50 = vld [vmem:[%s1694_s1 + $0x790] sm:$0xff]  ;;  %v867_v51 = vpack.c.bf16 %v277_v44, %v273_v43  ;;  %v741_v57 = vpack.c.bf16 %v274_v49, %v270_v48 }
  0x68   :  { %848 = vmatprep.subr.bf16.mxu1 %v847_v55  ;;  %v281_v55 = vld [vmem:[%s1694_s1 + $0x7d8] sm:$0xff]  ;;  %v869_v58 = vpack.c.bf16 %v276_v52, %v272_v50 }
  0x6a   :  { %722 = vmatpush1.bf16.msra.mxu0 %v721_v61  ;;  %v282_v61 = vld [vmem:[%s1694_s1 + $0x7e0] sm:$0xff] }
  0x6b   :  { %850 = vmatpush1.bf16.msra.mxu1 %v849_v62  ;;  %724 = vmatprep.subr.bf16.mxu0 %v723_v63  ;;  %v871_v62 = vpack.c.bf16 %v285_v56, %v281_v55  ;;  %v280_v63 = vld [vmem:[%s1694_s1 + $0x7d0] sm:$0xff]  ;;  %v745_v1 = vpack.c.bf16 %v282_v61, %v278_v60 }
  0x6c   :  { %852 = vmatprep.subr.bf16.mxu1 %v851_v3  ;;  %v873_v2 = vpack.c.bf16 %v284_v0, %v280_v63  ;;  %v28_v3 = vld [vmem:[%s1695_s0 + $0x10] sm:$0xff] }
  0x6e   :  { %726 = vmatpush1.bf16.msra.mxu0 %v725_v9  ;;  %v593_v9 = vsub.s32 1, %v588_v5 }
  0x6f   :  { %854 = vmatpush1.bf16.msra.mxu1 %v853_v10  ;;  %728 = vmatprep.subr.bf16.mxu0 %v727_v11  ;;  %v601_v10 = vsub.s32 3, %v588_v5  ;;  %v590_v11 = vrot.slane %v585_v7, %v589_v6 }
  0x70   :  { %856 = vmatprep.subr.bf16.mxu1 %v855_v15  ;;  %v594_v13 = vrot.slane %v585_v7, %v593_v9 }
  0x71   :  { %v602_v14 = vrot.slane %v585_v7, %v601_v10 }
  0x72   :  { %730 = vmatpush1.bf16.msra.mxu0 %v729_v21 }
  0x73   :  { %858 = vmatpush1.bf16.msra.mxu1 %v857_v22  ;;  %732 = vmatprep.subr.bf16.mxu0 %v731_v23 }
  0x74   :  { %860 = vmatprep.subr.bf16.mxu1 %v859_v27 }
  0x76   :  { %734 = vmatpush1.bf16.msra.mxu0 %v733_v33 }
  0x77   :  { %862 = vmatpush1.bf16.msra.mxu1 %v861_v34  ;;  %736 = vmatprep.subr.bf16.mxu0 %v735_v35 }
  0x78   :  { %864 = vmatprep.subr.bf16.mxu1 %v863_v39 }
  0x7a   :  { %738 = vmatpush1.bf16.msra.mxu0 %v737_v45 }
  0x7b   :  { %866 = vmatpush1.bf16.msra.mxu1 %v865_v46  ;;  %740 = vmatprep.subr.bf16.mxu0 %v739_v47 }
  0x7c   :  { %868 = vmatprep.subr.bf16.mxu1 %v867_v51 }
  0x7e   :  { %742 = vmatpush1.bf16.msra.mxu0 %v741_v57 }
  0x7f   :  { %870 = vmatpush1.bf16.msra.mxu1 %v869_v58  ;;  %744 = vmatprep.subr.bf16.mxu0 %v743_v59 }
  0x80   :  { %872 = vmatprep.subr.bf16.mxu1 %v871_v62 }
  0x82   :  { %746 = vmatpush1.bf16.msra.mxu0 %v745_v1 }
  0x83   :  { %874 = vmatpush1.bf16.msra.mxu1 %v873_v2 }
  0x85   :  { %422 = vmatmul.mubr.f32.vlgmr.msra.gmra.mrb[0].mxu0 %v28_v3 }
  0x86   :  { %564 = vmatmul.mubr.f32.vlgmr.msra.gmra.mrb[0].mxu1 %v28_v3 }
 0x158   :  { %v423_v15 = vpop.f32.mrb[0].mxu0 }
 0x159   :  { %v607_v16 = vadd.f32 %v590_v11, %v423_v15  ;;  %v565_v17 = vpop.f32.mrb[0].mxu1  ;;  %v425_v18 = vpop.f32.mrb[1].mxu0 }
 0x15a   :  { %v609_v19 = vadd.f32 %v598_v12, %v565_v17  ;;  %v608_v20 = vadd.f32 %v594_v13, %v425_v18  ;;  %v567_v21 = vpop.f32.mrb[1].mxu1 }
 0x15b   :  { %611 = vst [vmem:[%s1697_s3] sm:$0xff] %v607_v16  ;;  %v610_v22 = vadd.f32 %v602_v14, %v567_v21 }
 0x15c   :  { %613 = vst [vmem:[%s1697_s3 + $0x10] sm:$0xff] %v609_v19  ;;  %612 = vst [vmem:[%s1697_s3 + $0x8] sm:$0xff] %v608_v20 }
 0x15d   :  { %614 = vst [vmem:[%s1697_s3 + $0x18] sm:$0xff] %v610_v22 }

// kernel: forward.5
= control target key start
LH: loop header
LB: loop body
LE: loop exit
PB: predicated region body
PF: predicated region fallthrough
CT: control target
= control target key end

     0   :  { %8 = vsyncpa [#allocation4], 0  ;;  %s793_s12 = smov [#allocation3]   ;;  %s853_s0 = inlined_call_operand.vmem [shape: f32[8,384], index: 0, kind: input, shape index: {}]   ;;  %s854_s1 = inlined_call_operand.hbm [shape: f32[384,512], index: 1, kind: input, shape index: {}]   ;;  %s855_s2 = inlined_call_operand.vmem [shape: f32[1,512], index: 2, kind: input, shape index: {}]   ;;  %s856_s3 = inlined_call_operand.vmem [shape: f32[8,512], index: 3, kind: output, shape index: {}]  }
   0x1   :  { %s16_s13 = sshll.u32 %s793_s12, 4  ;;  %s769_s16 = scalar_lea.hbm %s854_s1, 24576  ;;  %s17_s13 = int_to_ptr.vmem [resolvable:$true] %s16_s13 }
   0x2   :  { %p770_p0 = scmp.ne.s32.totalorder %s854_s1, %s769_s16  ;;  %p773_p1 = scmp.lt.u32.totalorder %s769_s16, %s854_s1 }
   0x4   :  { %p775_p2 = pnand %p773_p1, %p770_p0 }
   0x6   :  { %778 = shalt.err (!%p775_p2)
}
   0x7   :  { %s779_s21 = scalar_lea.vmem %s17_s13, 24576  ;;  %p784_p4 = scmp.lt.s32.totalorder %s17_s13, %s17_s13 }
   0x8   :  { %p780_p3 = scmp.ne.s32.totalorder %s17_s13, %s779_s21  ;;  %p785_p5 = scmp.lt.s32.totalorder %s779_s21, %s779_s21 }
   0xa   :  { %p786_p6 = por %p785_p5, %p784_p4 }
   0xc   :  { %p787_p7 = pnand %p786_p6, %p780_p3 }
   0xe   :  { %790 = shalt.err (!%p787_p7)
}
   0xf   :  { %s794_s22 = smov 512   ;;  %s795_s23 = smov 32  }
  0x10   :  { %22 = dma.hbm_to_vmem [thread:$0]  %s854_s1, 24576, %s17_s13, [#allocation4], %s794_s22, %s794_s22, %s795_s23  }
  0x11   :  { %791 = dma.done.wait [#allocation4], 24576  }
  0x12   :  { %792 = vsyncadd [#allocation4], 4294942720  ;;  %v44_v0 = vld [vmem:[#allocation3 + $0x8] sm:$0xff]  ;;  %v46_v2 = vld [vmem:[#allocation3 + $0x18] sm:$0xff] }
  0x13   :  { %v48_v1 = vld [vmem:[#allocation3 + $0x28] sm:$0xff]  ;;  %v50_v4 = vld [vmem:[#allocation3 + $0x38] sm:$0xff]  ;;  %v43_v5 = vld [vmem:[#allocation3] sm:$0xff] }
  0x14   :  { %v569_v3 = vpack.c.bf16 %v48_v1, %v44_v0  ;;  %v47_v6 = vld [vmem:[#allocation3 + $0x20] sm:$0xff]  ;;  %v665_v7 = vpack.c.bf16 %v50_v4, %v46_v2  ;;  %v45_v9 = vld [vmem:[#allocation3 + $0x10] sm:$0xff]  ;;  %v52_v11 = vld [vmem:[#allocation3 + $0x48] sm:$0xff] }
  0x15   :  { %v571_v8 = vpack.c.bf16 %v47_v6, %v43_v5  ;;  %v49_v10 = vld [vmem:[#allocation3 + $0x30] sm:$0xff]  ;;  %v56_v13 = vld [vmem:[#allocation3 + $0x68] sm:$0xff]  ;;  %v54_v14 = vld [vmem:[#allocation3 + $0x58] sm:$0xff] }
  0x16   :  { %570 = vmatprep.subr.bf16.mxu0 %v569_v3  ;;  %v667_v12 = vpack.c.bf16 %v49_v10, %v45_v9  ;;  %v58_v15 = vld [vmem:[#allocation3 + $0x78] sm:$0xff]  ;;  %666 = vmatprep.subr.bf16.mxu1 %v665_v7  ;;  %v573_v16 = vpack.c.bf16 %v56_v13, %v52_v11  ;;  %v51_v18 = vld [vmem:[#allocation3 + $0x40] sm:$0xff]  ;;  %v53_v20 = vld [vmem:[#allocation3 + $0x50] sm:$0xff] }
  0x17   :  { %572 = vmatpush1.bf16.msra.mxu0 %v571_v8  ;;  %v669_v17 = vpack.c.bf16 %v58_v15, %v54_v14  ;;  %v55_v19 = vld [vmem:[#allocation3 + $0x60] sm:$0xff]  ;;  %v57_v22 = vld [vmem:[#allocation3 + $0x70] sm:$0xff]  ;;  %v60_v23 = vld [vmem:[#allocation3 + $0x88] sm:$0xff] }
  0x18   :  { %668 = vmatpush1.bf16.msra.mxu1 %v667_v12  ;;  %v575_v21 = vpack.c.bf16 %v55_v19, %v51_v18  ;;  %v64_v24 = vld [vmem:[#allocation3 + $0xa8] sm:$0xff]  ;;  %574 = vmatprep.subr.bf16.mxu0 %v573_v16  ;;  %v671_v25 = vpack.c.bf16 %v57_v22, %v53_v20  ;;  %v62_v27 = vld [vmem:[#allocation3 + $0x98] sm:$0xff]  ;;  %v59_v29 = vld [vmem:[#allocation3 + $0x80] sm:$0xff] }
  0x19   :  { %670 = vmatprep.subr.bf16.mxu1 %v669_v17  ;;  %v577_v26 = vpack.c.bf16 %v64_v24, %v60_v23  ;;  %v66_v28 = vld [vmem:[#allocation3 + $0xb8] sm:$0xff]  ;;  %v63_v31 = vld [vmem:[#allocation3 + $0xa0] sm:$0xff]  ;;  %v61_v32 = vld [vmem:[#allocation3 + $0x90] sm:$0xff] }
  0x1a   :  { %v673_v30 = vpack.c.bf16 %v66_v28, %v62_v27  ;;  %v65_v33 = vld [vmem:[#allocation3 + $0xb0] sm:$0xff]  ;;  %v579_v34 = vpack.c.bf16 %v63_v31, %v59_v29  ;;  %v68_v35 = vld [vmem:[#allocation3 + $0xc8] sm:$0xff]  ;;  %v70_v37 = vld [vmem:[#allocation3 + $0xd8] sm:$0xff] }
  0x1b   :  { %576 = vmatpush1.bf16.msra.mxu0 %v575_v21  ;;  %v72_v36 = vld [vmem:[#allocation3 + $0xe8] sm:$0xff]  ;;  %v675_v38 = vpack.c.bf16 %v65_v33, %v61_v32  ;;  %v74_v40 = vld [vmem:[#allocation3 + $0xf8] sm:$0xff]  ;;  %v67_v41 = vld [vmem:[#allocation3 + $0xc0] sm:$0xff] }
  0x1c   :  { %672 = vmatpush1.bf16.msra.mxu1 %v671_v25  ;;  %578 = vmatprep.subr.bf16.mxu0 %v577_v26  ;;  %v581_v39 = vpack.c.bf16 %v72_v36, %v68_v35  ;;  %v71_v42 = vld [vmem:[#allocation3 + $0xe0] sm:$0xff]  ;;  %v677_v43 = vpack.c.bf16 %v74_v40, %v70_v37  ;;  %v69_v44 = vld [vmem:[#allocation3 + $0xd0] sm:$0xff]  ;;  %v76_v46 = vld [vmem:[#allocation3 + $0x108] sm:$0xff] }
  0x1d   :  { %674 = vmatprep.subr.bf16.mxu1 %v673_v30  ;;  %v73_v45 = vld [vmem:[#allocation3 + $0xf0] sm:$0xff]  ;;  %v80_v47 = vld [vmem:[#allocation3 + $0x128] sm:$0xff]  ;;  %v78_v48 = vld [vmem:[#allocation3 + $0x118] sm:$0xff]  ;;  %v583_v50 = vpack.c.bf16 %v71_v42, %v67_v41 }
  0x1e   :  { %v82_v49 = vld [vmem:[#allocation3 + $0x138] sm:$0xff]  ;;  %v679_v51 = vpack.c.bf16 %v73_v45, %v69_v44  ;;  %v585_v52 = vpack.c.bf16 %v80_v47, %v76_v46  ;;  %v75_v53 = vld [vmem:[#allocation3 + $0x100] sm:$0xff]  ;;  %v77_v55 = vld [vmem:[#allocation3 + $0x110] sm:$0xff] }
  0x1f   :  { %580 = vmatpush1.bf16.msra.mxu0 %v579_v34  ;;  %v79_v54 = vld [vmem:[#allocation3 + $0x120] sm:$0xff]  ;;  %v681_v56 = vpack.c.bf16 %v82_v49, %v78_v48  ;;  %v81_v57 = vld [vmem:[#allocation3 + $0x130] sm:$0xff]  ;;  %v84_v58 = vld [vmem:[#allocation3 + $0x148] sm:$0xff] }
  0x20   :  { %676 = vmatpush1.bf16.msra.mxu1 %v675_v38  ;;  %582 = vmatprep.subr.bf16.mxu0 %v581_v39  ;;  %v88_v59 = vld [vmem:[#allocation3 + $0x168] sm:$0xff]  ;;  %v86_v60 = vld [vmem:[#allocation3 + $0x158] sm:$0xff]  ;;  %v587_v62 = vpack.c.bf16 %v79_v54, %v75_v53  ;;  %v683_v63 = vpack.c.bf16 %v81_v57, %v77_v55  ;;  %v83_v1 = vld [vmem:[#allocation3 + $0x140] sm:$0xff] }
  0x21   :  { %678 = vmatprep.subr.bf16.mxu1 %v677_v43  ;;  %v90_v61 = vld [vmem:[#allocation3 + $0x178] sm:$0xff]  ;;  %v589_v0 = vpack.c.bf16 %v88_v59, %v84_v58  ;;  %v87_v2 = vld [vmem:[#allocation3 + $0x160] sm:$0xff]  ;;  %v85_v3 = vld [vmem:[#allocation3 + $0x150] sm:$0xff] }
  0x22   :  { %v685_v4 = vpack.c.bf16 %v90_v61, %v86_v60  ;;  %v89_v5 = vld [vmem:[#allocation3 + $0x170] sm:$0xff]  ;;  %v92_v6 = vld [vmem:[#allocation3 + $0x188] sm:$0xff]  ;;  %v94_v8 = vld [vmem:[#allocation3 + $0x198] sm:$0xff]  ;;  %v591_v10 = vpack.c.bf16 %v87_v2, %v83_v1 }
  0x23   :  { %584 = vmatpush1.bf16.msra.mxu0 %v583_v50  ;;  %v96_v7 = vld [vmem:[#allocation3 + $0x1a8] sm:$0xff]  ;;  %v98_v9 = vld [vmem:[#allocation3 + $0x1b8] sm:$0xff]  ;;  %v687_v11 = vpack.c.bf16 %v89_v5, %v85_v3  ;;  %v91_v13 = vld [vmem:[#allocation3 + $0x180] sm:$0xff] }
  0x24   :  { %680 = vmatpush1.bf16.msra.mxu1 %v679_v51  ;;  %586 = vmatprep.subr.bf16.mxu0 %v585_v52  ;;  %v593_v12 = vpack.c.bf16 %v96_v7, %v92_v6  ;;  %v95_v14 = vld [vmem:[#allocation3 + $0x1a0] sm:$0xff]  ;;  %v93_v15 = vld [vmem:[#allocation3 + $0x190] sm:$0xff]  ;;  %v689_v16 = vpack.c.bf16 %v98_v9, %v94_v8  ;;  %v100_v18 = vld [vmem:[#allocation3 + $0x1c8] sm:$0xff] }
  0x25   :  { %682 = vmatprep.subr.bf16.mxu1 %v681_v56  ;;  %v97_v17 = vld [vmem:[#allocation3 + $0x1b0] sm:$0xff]  ;;  %v104_v19 = vld [vmem:[#allocation3 + $0x1e8] sm:$0xff]  ;;  %v102_v20 = vld [vmem:[#allocation3 + $0x1d8] sm:$0xff]  ;;  %v595_v22 = vpack.c.bf16 %v95_v14, %v91_v13 }
  0x26   :  { %v106_v21 = vld [vmem:[#allocation3 + $0x1f8] sm:$0xff]  ;;  %v691_v23 = vpack.c.bf16 %v97_v17, %v93_v15  ;;  %v597_v24 = vpack.c.bf16 %v104_v19, %v100_v18  ;;  %v99_v25 = vld [vmem:[#allocation3 + $0x1c0] sm:$0xff]  ;;  %v101_v27 = vld [vmem:[#allocation3 + $0x1d0] sm:$0xff] }
  0x27   :  { %588 = vmatpush1.bf16.msra.mxu0 %v587_v62  ;;  %v103_v26 = vld [vmem:[#allocation3 + $0x1e0] sm:$0xff]  ;;  %v693_v28 = vpack.c.bf16 %v106_v21, %v102_v20  ;;  %v105_v29 = vld [vmem:[#allocation3 + $0x1f0] sm:$0xff]  ;;  %v108_v30 = vld [vmem:[#allocation3 + $0x208] sm:$0xff] }
  0x28   :  { %684 = vmatpush1.bf16.msra.mxu1 %v683_v63  ;;  %590 = vmatprep.subr.bf16.mxu0 %v589_v0  ;;  %v112_v31 = vld [vmem:[#allocation3 + $0x228] sm:$0xff]  ;;  %v110_v32 = vld [vmem:[#allocation3 + $0x218] sm:$0xff]  ;;  %v599_v34 = vpack.c.bf16 %v103_v26, %v99_v25  ;;  %v695_v35 = vpack.c.bf16 %v105_v29, %v101_v27  ;;  %v107_v37 = vld [vmem:[#allocation3 + $0x200] sm:$0xff] }
  0x29   :  { %686 = vmatprep.subr.bf16.mxu1 %v685_v4  ;;  %v114_v33 = vld [vmem:[#allocation3 + $0x238] sm:$0xff]  ;;  %v601_v36 = vpack.c.bf16 %v112_v31, %v108_v30  ;;  %v111_v38 = vld [vmem:[#allocation3 + $0x220] sm:$0xff]  ;;  %v109_v39 = vld [vmem:[#allocation3 + $0x210] sm:$0xff] }
  0x2a   :  { %v697_v40 = vpack.c.bf16 %v114_v33, %v110_v32  ;;  %v113_v41 = vld [vmem:[#allocation3 + $0x230] sm:$0xff]  ;;  %v116_v42 = vld [vmem:[#allocation3 + $0x248] sm:$0xff]  ;;  %v118_v44 = vld [vmem:[#allocation3 + $0x258] sm:$0xff]  ;;  %v603_v46 = vpack.c.bf16 %v111_v38, %v107_v37 }
  0x2b   :  { %592 = vmatpush1.bf16.msra.mxu0 %v591_v10  ;;  %v120_v43 = vld [vmem:[#allocation3 + $0x268] sm:$0xff]  ;;  %v122_v45 = vld [vmem:[#allocation3 + $0x278] sm:$0xff]  ;;  %v699_v47 = vpack.c.bf16 %v113_v41, %v109_v39  ;;  %v115_v49 = vld [vmem:[#allocation3 + $0x240] sm:$0xff] }
  0x2c   :  { %688 = vmatpush1.bf16.msra.mxu1 %v687_v11  ;;  %594 = vmatprep.subr.bf16.mxu0 %v593_v12  ;;  %v605_v48 = vpack.c.bf16 %v120_v43, %v116_v42  ;;  %v119_v50 = vld [vmem:[#allocation3 + $0x260] sm:$0xff]  ;;  %v117_v51 = vld [vmem:[#allocation3 + $0x250] sm:$0xff]  ;;  %v701_v52 = vpack.c.bf16 %v122_v45, %v118_v44  ;;  %v124_v54 = vld [vmem:[#allocation3 + $0x288] sm:$0xff] }
  0x2d   :  { %690 = vmatprep.subr.bf16.mxu1 %v689_v16  ;;  %v121_v53 = vld [vmem:[#allocation3 + $0x270] sm:$0xff]  ;;  %v128_v55 = vld [vmem:[#allocation3 + $0x2a8] sm:$0xff]  ;;  %v126_v56 = vld [vmem:[#allocation3 + $0x298] sm:$0xff]  ;;  %v607_v58 = vpack.c.bf16 %v119_v50, %v115_v49 }
  0x2e   :  { %v130_v57 = vld [vmem:[#allocation3 + $0x2b8] sm:$0xff]  ;;  %v703_v59 = vpack.c.bf16 %v121_v53, %v117_v51  ;;  %v609_v60 = vpack.c.bf16 %v128_v55, %v124_v54  ;;  %v123_v61 = vld [vmem:[#allocation3 + $0x280] sm:$0xff]  ;;  %v125_v63 = vld [vmem:[#allocation3 + $0x290] sm:$0xff] }
  0x2f   :  { %596 = vmatpush1.bf16.msra.mxu0 %v595_v22  ;;  %v127_v62 = vld [vmem:[#allocation3 + $0x2a0] sm:$0xff]  ;;  %v705_v0 = vpack.c.bf16 %v130_v57, %v126_v56  ;;  %v129_v1 = vld [vmem:[#allocation3 + $0x2b0] sm:$0xff]  ;;  %v132_v2 = vld [vmem:[#allocation3 + $0x2c8] sm:$0xff] }
  0x30   :  { %692 = vmatpush1.bf16.msra.mxu1 %v691_v23  ;;  %598 = vmatprep.subr.bf16.mxu0 %v597_v24  ;;  %v136_v3 = vld [vmem:[#allocation3 + $0x2e8] sm:$0xff]  ;;  %v134_v4 = vld [vmem:[#allocation3 + $0x2d8] sm:$0xff]  ;;  %v611_v6 = vpack.c.bf16 %v127_v62, %v123_v61  ;;  %v131_v7 = vld [vmem:[#allocation3 + $0x2c0] sm:$0xff]  ;;  %v707_v8 = vpack.c.bf16 %v129_v1, %v125_v63 }
  0x31   :  { %694 = vmatprep.subr.bf16.mxu1 %v693_v28  ;;  %v138_v5 = vld [vmem:[#allocation3 + $0x2f8] sm:$0xff]  ;;  %v613_v9 = vpack.c.bf16 %v136_v3, %v132_v2  ;;  %v135_v10 = vld [vmem:[#allocation3 + $0x2e0] sm:$0xff]  ;;  %v133_v11 = vld [vmem:[#allocation3 + $0x2d0] sm:$0xff] }
  0x32   :  { %v137_v12 = vld [vmem:[#allocation3 + $0x2f0] sm:$0xff]  ;;  %v709_v13 = vpack.c.bf16 %v138_v5, %v134_v4  ;;  %v140_v14 = vld [vmem:[#allocation3 + $0x308] sm:$0xff]  ;;  %v142_v17 = vld [vmem:[#allocation3 + $0x318] sm:$0xff]  ;;  %v615_v19 = vpack.c.bf16 %v135_v10, %v131_v7 }
  0x33   :  { %600 = vmatpush1.bf16.msra.mxu0 %v599_v34  ;;  %v144_v15 = vld [vmem:[#allocation3 + $0x328] sm:$0xff]  ;;  %v146_v18 = vld [vmem:[#allocation3 + $0x338] sm:$0xff]  ;;  %v711_v20 = vpack.c.bf16 %v137_v12, %v133_v11  ;;  %v139_v22 = vld [vmem:[#allocation3 + $0x300] sm:$0xff] }
  0x34   :  { %696 = vmatpush1.bf16.msra.mxu1 %v695_v35  ;;  %602 = vmatprep.subr.bf16.mxu0 %v601_v36  ;;  %v41_v16 = vld [vmem:[%s853_s0 + $0x8] sm:$0xff]  ;;  %v617_v21 = vpack.c.bf16 %v144_v15, %v140_v14  ;;  %v143_v23 = vld [vmem:[#allocation3 + $0x320] sm:$0xff]  ;;  %v141_v24 = vld [vmem:[#allocation3 + $0x310] sm:$0xff]  ;;  %v713_v25 = vpack.c.bf16 %v146_v18, %v142_v17 }
  0x35   :  { %698 = vmatprep.subr.bf16.mxu1 %v697_v40  ;;  %299 = vmatprep.mubr.f32.mxu0 %v41_v16  ;;  %v145_v26 = vld [vmem:[#allocation3 + $0x330] sm:$0xff]  ;;  %v148_v27 = vld [vmem:[#allocation3 + $0x348] sm:$0xff]  ;;  %v150_v29 = vld [vmem:[#allocation3 + $0x358] sm:$0xff]  ;;  %v619_v31 = vpack.c.bf16 %v143_v23, %v139_v22 }
  0x36   :  { %441 = vmatprep.mubr.f32.mxu1 %v41_v16  ;;  %v152_v28 = vld [vmem:[#allocation3 + $0x368] sm:$0xff]  ;;  %v154_v30 = vld [vmem:[#allocation3 + $0x378] sm:$0xff]  ;;  %v715_v32 = vpack.c.bf16 %v145_v26, %v141_v24  ;;  %v147_v34 = vld [vmem:[#allocation3 + $0x340] sm:$0xff] }
  0x37   :  { %604 = vmatpush1.bf16.msra.mxu0 %v603_v46  ;;  %v621_v33 = vpack.c.bf16 %v152_v28, %v148_v27  ;;  %v151_v35 = vld [vmem:[#allocation3 + $0x360] sm:$0xff]  ;;  %v149_v36 = vld [vmem:[#allocation3 + $0x350] sm:$0xff]  ;;  %v717_v37 = vpack.c.bf16 %v154_v30, %v150_v29  ;;  %v156_v39 = vld [vmem:[#allocation3 + $0x388] sm:$0xff] }
  0x38   :  { %700 = vmatpush1.bf16.msra.mxu1 %v699_v47  ;;  %606 = vmatprep.subr.bf16.mxu0 %v605_v48  ;;  %v153_v38 = vld [vmem:[#allocation3 + $0x370] sm:$0xff]  ;;  %v160_v40 = vld [vmem:[#allocation3 + $0x3a8] sm:$0xff]  ;;  %v158_v41 = vld [vmem:[#allocation3 + $0x398] sm:$0xff]  ;;  %v623_v43 = vpack.c.bf16 %v151_v35, %v147_v34 }
  0x39   :  { %702 = vmatprep.subr.bf16.mxu1 %v701_v52  ;;  %v162_v42 = vld [vmem:[#allocation3 + $0x3b8] sm:$0xff]  ;;  %v719_v44 = vpack.c.bf16 %v153_v38, %v149_v36  ;;  %v625_v45 = vpack.c.bf16 %v160_v40, %v156_v39  ;;  %v155_v46 = vld [vmem:[#allocation3 + $0x380] sm:$0xff]  ;;  %v157_v48 = vld [vmem:[#allocation3 + $0x390] sm:$0xff]  ;;  %v796_v38 = vmov 0.0  }
  0x3a   :  { %v159_v47 = vld [vmem:[#allocation3 + $0x3a0] sm:$0xff]  ;;  %v721_v49 = vpack.c.bf16 %v162_v42, %v158_v41  ;;  %v161_v50 = vld [vmem:[#allocation3 + $0x3b0] sm:$0xff]  ;;  %v164_v51 = vld [vmem:[#allocation3 + $0x3c8] sm:$0xff] }
  0x3b   :  { %608 = vmatpush1.bf16.msra.mxu0 %v607_v58  ;;  %v168_v52 = vld [vmem:[#allocation3 + $0x3e8] sm:$0xff]  ;;  %v166_v53 = vld [vmem:[#allocation3 + $0x3d8] sm:$0xff]  ;;  %v627_v55 = vpack.c.bf16 %v159_v47, %v155_v46  ;;  %v723_v56 = vpack.c.bf16 %v161_v50, %v157_v48  ;;  %v163_v58 = vld [vmem:[#allocation3 + $0x3c0] sm:$0xff] }
  0x3c   :  { %704 = vmatpush1.bf16.msra.mxu1 %v703_v59  ;;  %610 = vmatprep.subr.bf16.mxu0 %v609_v60  ;;  %v170_v54 = vld [vmem:[#allocation3 + $0x3f8] sm:$0xff]  ;;  %v629_v57 = vpack.c.bf16 %v168_v52, %v164_v51  ;;  %v167_v59 = vld [vmem:[#allocation3 + $0x3e0] sm:$0xff]  ;;  %v165_v60 = vld [vmem:[#allocation3 + $0x3d0] sm:$0xff] }
  0x3d   :  { %706 = vmatprep.subr.bf16.mxu1 %v705_v0  ;;  %v725_v61 = vpack.c.bf16 %v170_v54, %v166_v53  ;;  %v169_v62 = vld [vmem:[#allocation3 + $0x3f0] sm:$0xff]  ;;  %v172_v63 = vld [vmem:[#allocation3 + $0x408] sm:$0xff]  ;;  %v174_v1 = vld [vmem:[#allocation3 + $0x418] sm:$0xff]  ;;  %v631_v3 = vpack.c.bf16 %v167_v59, %v163_v58 }
  0x3e   :  { %v176_v0 = vld [vmem:[#allocation3 + $0x428] sm:$0xff]  ;;  %v178_v2 = vld [vmem:[#allocation3 + $0x438] sm:$0xff]  ;;  %v727_v4 = vpack.c.bf16 %v169_v62, %v165_v60  ;;  %v175_v7 = vld [vmem:[#allocation3 + $0x420] sm:$0xff] }
  0x3f   :  { %612 = vmatpush1.bf16.msra.mxu0 %v611_v6  ;;  %v633_v5 = vpack.c.bf16 %v176_v0, %v172_v63  ;;  %v171_v6 = vld [vmem:[#allocation3 + $0x400] sm:$0xff]  ;;  %v177_v10 = vld [vmem:[#allocation3 + $0x430] sm:$0xff]  ;;  %v180_v11 = vld [vmem:[#allocation3 + $0x448] sm:$0xff] }
  0x40   :  { %708 = vmatpush1.bf16.msra.mxu1 %v707_v8  ;;  %614 = vmatprep.subr.bf16.mxu0 %v613_v9  ;;  %v173_v8 = vld [vmem:[#allocation3 + $0x410] sm:$0xff]  ;;  %v729_v9 = vpack.c.bf16 %v178_v2, %v174_v1  ;;  %v184_v12 = vld [vmem:[#allocation3 + $0x468] sm:$0xff]  ;;  %v186_v14 = vld [vmem:[#allocation3 + $0x478] sm:$0xff]  ;;  %v635_v16 = vpack.c.bf16 %v175_v7, %v171_v6 }
  0x41   :  { %710 = vmatprep.subr.bf16.mxu1 %v709_v13  ;;  %v182_v13 = vld [vmem:[#allocation3 + $0x458] sm:$0xff]  ;;  %v40_v15 = vld [vmem:[%s853_s0] sm:$0xff]  ;;  %v731_v17 = vpack.c.bf16 %v177_v10, %v173_v8  ;;  %v637_v18 = vpack.c.bf16 %v184_v12, %v180_v11  ;;  %v185_v23 = vld [vmem:[#allocation3 + $0x470] sm:$0xff] }
  0x42   :  { %v733_v22 = vpack.c.bf16 %v186_v14, %v182_v13  ;;  %v188_v24 = vld [vmem:[#allocation3 + $0x488] sm:$0xff]  ;;  %v190_v26 = vld [vmem:[#allocation3 + $0x498] sm:$0xff]  ;;  %v193_v35 = vld [vmem:[#allocation3 + $0x4b0] sm:$0xff] }
  0x43   :  { %616 = vmatpush1.bf16.msra.mxu0 %v615_v19  ;;  %v179_v19 = vld [vmem:[#allocation3 + $0x440] sm:$0xff]  ;;  %v194_v27 = vld [vmem:[#allocation3 + $0x4b8] sm:$0xff]  ;;  %v196_v36 = vld [vmem:[#allocation3 + $0x4c8] sm:$0xff] }
  0x44   :  { %712 = vmatpush1.bf16.msra.mxu1 %v711_v20  ;;  %618 = vmatprep.subr.bf16.mxu0 %v617_v21  ;;  %v183_v20 = vld [vmem:[#allocation3 + $0x460] sm:$0xff]  ;;  %v181_v21 = vld [vmem:[#allocation3 + $0x450] sm:$0xff]  ;;  %v737_v34 = vpack.c.bf16 %v194_v27, %v190_v26  ;;  %v198_v39 = vld [vmem:[#allocation3 + $0x4d8] sm:$0xff] }
  0x45   :  { %714 = vmatprep.subr.bf16.mxu1 %v713_v25  ;;  %v192_v25 = vld [vmem:[#allocation3 + $0x4a8] sm:$0xff]  ;;  %v639_v28 = vpack.c.bf16 %v183_v20, %v179_v19  ;;  %v735_v29 = vpack.c.bf16 %v185_v23, %v181_v21  ;;  %v202_v40 = vld [vmem:[#allocation3 + $0x4f8] sm:$0xff]  ;;  %v197_v46 = vld [vmem:[#allocation3 + $0x4d0] sm:$0xff] }
  0x46   :  { %v641_v30 = vpack.c.bf16 %v192_v25, %v188_v24  ;;  %v741_v47 = vpack.c.bf16 %v202_v40, %v198_v39  ;;  %v201_v48 = vld [vmem:[#allocation3 + $0x4f0] sm:$0xff]  ;;  %v208_v50 = vld [vmem:[#allocation3 + $0x528] sm:$0xff]  ;;  %v206_v51 = vld [vmem:[#allocation3 + $0x518] sm:$0xff] }
  0x47   :  { %620 = vmatpush1.bf16.msra.mxu0 %v619_v31  ;;  %v187_v31 = vld [vmem:[#allocation3 + $0x480] sm:$0xff]  ;;  %v210_v52 = vld [vmem:[#allocation3 + $0x538] sm:$0xff]  ;;  %v743_v54 = vpack.c.bf16 %v201_v48, %v197_v46  ;;  %v205_v58 = vld [vmem:[#allocation3 + $0x510] sm:$0xff] }
  0x48   :  { %716 = vmatpush1.bf16.msra.mxu1 %v715_v32  ;;  %622 = vmatprep.subr.bf16.mxu0 %v621_v33  ;;  %v191_v32 = vld [vmem:[#allocation3 + $0x4a0] sm:$0xff]  ;;  %v189_v33 = vld [vmem:[#allocation3 + $0x490] sm:$0xff]  ;;  %v745_v59 = vpack.c.bf16 %v210_v52, %v206_v51  ;;  %v216_v62 = vld [vmem:[#allocation3 + $0x568] sm:$0xff] }
  0x49   :  { %718 = vmatprep.subr.bf16.mxu1 %v717_v37  ;;  %v200_v37 = vld [vmem:[#allocation3 + $0x4e8] sm:$0xff]  ;;  %v643_v41 = vpack.c.bf16 %v191_v32, %v187_v31  ;;  %v739_v42 = vpack.c.bf16 %v193_v35, %v189_v33  ;;  %v209_v60 = vld [vmem:[#allocation3 + $0x530] sm:$0xff]  ;;  %v214_v63 = vld [vmem:[#allocation3 + $0x558] sm:$0xff] }
  0x4a   :  { %v218_v0 = vld [vmem:[#allocation3 + $0x578] sm:$0xff]  ;;  %v747_v2 = vpack.c.bf16 %v209_v60, %v205_v58  ;;  %v213_v6 = vld [vmem:[#allocation3 + $0x550] sm:$0xff]  ;;  %v224_v10 = vld [vmem:[#allocation3 + $0x5a8] sm:$0xff] }
  0x4b   :  { %624 = vmatpush1.bf16.msra.mxu0 %v623_v43  ;;  %v645_v43 = vpack.c.bf16 %v200_v37, %v196_v36  ;;  %v749_v7 = vpack.c.bf16 %v218_v0, %v214_v63  ;;  %v217_v8 = vld [vmem:[#allocation3 + $0x570] sm:$0xff]  ;;  %v222_v11 = vld [vmem:[#allocation3 + $0x598] sm:$0xff]  ;;  %v228_v21 = vld [vmem:[#allocation3 + $0x5c8] sm:$0xff]  ;;  %v536_v36 = vlaneseq }
  0x4c   :  { %720 = vmatpush1.bf16.msra.mxu1 %v719_v44  ;;  %626 = vmatprep.subr.bf16.mxu0 %v625_v45  ;;  %v195_v44 = vld [vmem:[#allocation3 + $0x4c0] sm:$0xff]  ;;  %v226_v12 = vld [vmem:[#allocation3 + $0x5b8] sm:$0xff]  ;;  %v751_v14 = vpack.c.bf16 %v217_v8, %v213_v6  ;;  %v225_v20 = vld [vmem:[#allocation3 + $0x5b0] sm:$0xff] }
  0x4d   :  { %722 = vmatprep.subr.bf16.mxu1 %v721_v49  ;;  %v199_v45 = vld [vmem:[#allocation3 + $0x4e0] sm:$0xff]  ;;  %v204_v49 = vld [vmem:[#allocation3 + $0x508] sm:$0xff]  ;;  %v753_v19 = vpack.c.bf16 %v226_v12, %v222_v11  ;;  %v230_v23 = vld [vmem:[#allocation3 + $0x5d8] sm:$0xff]  ;;  %v537_v37 = vshrl.u32 %v536_v36, 7 }
  0x4e   :  { %v647_v53 = vpack.c.bf16 %v199_v45, %v195_v44  ;;  %v234_v24 = vld [vmem:[#allocation3 + $0x5f8] sm:$0xff]  ;;  %v229_v31 = vld [vmem:[#allocation3 + $0x5d0] sm:$0xff]  ;;  %v534_v39 = vld [vmem:[%s855_s2] sm:$0xf] }
  0x4f   :  { %628 = vmatpush1.bf16.msra.mxu0 %v627_v55  ;;  %v649_v55 = vpack.c.bf16 %v208_v50, %v204_v49  ;;  %v233_v32 = vld [vmem:[#allocation3 + $0x5f0] sm:$0xff]  ;;  %v546_v40 = vsub.s32 2, %v537_v37 }
  0x50   :  { %724 = vmatpush1.bf16.msra.mxu1 %v723_v56  ;;  %630 = vmatprep.subr.bf16.mxu0 %v629_v57  ;;  %v203_v56 = vld [vmem:[#allocation3 + $0x500] sm:$0xff]  ;;  %v42_v35 = vld [vmem:[%s853_s0 + $0x10] sm:$0xff] }
  0x51   :  { %726 = vmatprep.subr.bf16.mxu1 %v725_v61  ;;  %v207_v57 = vld [vmem:[#allocation3 + $0x520] sm:$0xff]  ;;  %v212_v61 = vld [vmem:[#allocation3 + $0x548] sm:$0xff]  ;;  %v547_v44 = vrot.slane %v534_v39, %v546_v40 }
  0x52   :  { %v651_v1 = vpack.c.bf16 %v207_v57, %v203_v56 }
  0x53   :  { %632 = vmatpush1.bf16.msra.mxu0 %v631_v3  ;;  %v653_v3 = vpack.c.bf16 %v216_v62, %v212_v61 }
  0x54   :  { %728 = vmatpush1.bf16.msra.mxu1 %v727_v4  ;;  %634 = vmatprep.subr.bf16.mxu0 %v633_v5  ;;  %v211_v4 = vld [vmem:[#allocation3 + $0x540] sm:$0xff] }
  0x55   :  { %730 = vmatprep.subr.bf16.mxu1 %v729_v9  ;;  %v215_v5 = vld [vmem:[#allocation3 + $0x560] sm:$0xff]  ;;  %v220_v9 = vld [vmem:[#allocation3 + $0x588] sm:$0xff] }
  0x56   :  { %300 = vmatmul.mubr.f32.vlgmr.msra.gmra.mrb[0].mxu0 %v40_v15  ;;  %v655_v13 = vpack.c.bf16 %v215_v5, %v211_v4 }
  0x57   :  { %636 = vmatpush1.bf16.msra.mxu0 %v635_v16  ;;  %442 = vmatmul.mubr.f32.vlgmr.msra.gmra.mrb[0].mxu1 %v40_v15  ;;  %v657_v15 = vpack.c.bf16 %v224_v10, %v220_v9  ;;  %v219_v16 = vld [vmem:[#allocation3 + $0x580] sm:$0xff] }
  0x58   :  { %732 = vmatpush1.bf16.msra.mxu1 %v731_v17  ;;  %638 = vmatprep.subr.bf16.mxu0 %v637_v18  ;;  %v223_v17 = vld [vmem:[#allocation3 + $0x5a0] sm:$0xff]  ;;  %v221_v18 = vld [vmem:[#allocation3 + $0x590] sm:$0xff] }
  0x59   :  { %734 = vmatprep.subr.bf16.mxu1 %v733_v22  ;;  %370 = vmatprep.mubr.f32.mxu0 %v796_v38  ;;  %v232_v22 = vld [vmem:[#allocation3 + $0x5e8] sm:$0xff]  ;;  %v659_v25 = vpack.c.bf16 %v223_v17, %v219_v16  ;;  %v755_v26 = vpack.c.bf16 %v225_v20, %v221_v18 }
  0x5a   :  { %512 = vmatprep.mubr.f32.mxu1 %v796_v38  ;;  %v661_v27 = vpack.c.bf16 %v232_v22, %v228_v21  ;;  %v538_v38 = vsub.s32 0, %v537_v37 }
  0x5b   :  { %640 = vmatpush1.bf16.msra.mxu0 %v639_v28  ;;  %v227_v28 = vld [vmem:[#allocation3 + $0x5c0] sm:$0xff] }
  0x5c   :  { %736 = vmatpush1.bf16.msra.mxu1 %v735_v29  ;;  %642 = vmatprep.subr.bf16.mxu0 %v641_v30  ;;  %v231_v29 = vld [vmem:[#allocation3 + $0x5e0] sm:$0xff]  ;;  %v757_v30 = vpack.c.bf16 %v234_v24, %v230_v23 }
  0x5d   :  { %738 = vmatprep.subr.bf16.mxu1 %v737_v34  ;;  %v663_v33 = vpack.c.bf16 %v231_v29, %v227_v28  ;;  %v759_v34 = vpack.c.bf16 %v233_v32, %v229_v31 }
  0x5f   :  { %644 = vmatpush1.bf16.msra.mxu0 %v643_v41  ;;  %v542_v41 = vsub.s32 1, %v537_v37 }
  0x60   :  { %740 = vmatpush1.bf16.msra.mxu1 %v739_v42  ;;  %646 = vmatprep.subr.bf16.mxu0 %v645_v43  ;;  %v550_v42 = vsub.s32 3, %v537_v37  ;;  %v539_v43 = vrot.slane %v534_v39, %v538_v38 }
  0x61   :  { %742 = vmatprep.subr.bf16.mxu1 %v741_v47  ;;  %v543_v45 = vrot.slane %v534_v39, %v542_v41 }
  0x62   :  { %v551_v46 = vrot.slane %v534_v39, %v550_v42 }
  0x63   :  { %648 = vmatpush1.bf16.msra.mxu0 %v647_v53 }
  0x64   :  { %744 = vmatpush1.bf16.msra.mxu1 %v743_v54  ;;  %650 = vmatprep.subr.bf16.mxu0 %v649_v55 }
  0x65   :  { %746 = vmatprep.subr.bf16.mxu1 %v745_v59 }
  0x67   :  { %652 = vmatpush1.bf16.msra.mxu0 %v651_v1 }
  0x68   :  { %748 = vmatpush1.bf16.msra.mxu1 %v747_v2  ;;  %654 = vmatprep.subr.bf16.mxu0 %v653_v3 }
  0x69   :  { %750 = vmatprep.subr.bf16.mxu1 %v749_v7 }
  0x6b   :  { %656 = vmatpush1.bf16.msra.mxu0 %v655_v13 }
  0x6c   :  { %752 = vmatpush1.bf16.msra.mxu1 %v751_v14  ;;  %658 = vmatprep.subr.bf16.mxu0 %v657_v15 }
  0x6d   :  { %754 = vmatprep.subr.bf16.mxu1 %v753_v19 }
  0x6f   :  { %660 = vmatpush1.bf16.msra.mxu0 %v659_v25 }
  0x70   :  { %756 = vmatpush1.bf16.msra.mxu1 %v755_v26  ;;  %662 = vmatprep.subr.bf16.mxu0 %v661_v27 }
  0x71   :  { %758 = vmatprep.subr.bf16.mxu1 %v757_v30 }
  0x73   :  { %664 = vmatpush1.bf16.msra.mxu0 %v663_v33 }
  0x74   :  { %760 = vmatpush1.bf16.msra.mxu1 %v759_v34 }
  0x76   :  { %371 = vmatmul.mubr.f32.vlgmr.msra.gmra.mrb[0].mxu0 %v42_v35 }
  0x77   :  { %513 = vmatmul.mubr.f32.vlgmr.msra.gmra.mrb[0].mxu1 %v42_v35 }
 0x149   :  { %v372_v47 = vpop.f32.mrb[0].mxu0 }
 0x14a   :  { %v556_v48 = vadd.f32 %v539_v43, %v372_v47  ;;  %v514_v49 = vpop.f32.mrb[0].mxu1  ;;  %v374_v50 = vpop.f32.mrb[1].mxu0 }
 0x14b   :  { %v558_v51 = vadd.f32 %v547_v44, %v514_v49  ;;  %v557_v52 = vadd.f32 %v543_v45, %v374_v50  ;;  %v516_v53 = vpop.f32.mrb[1].mxu1 }
 0x14c   :  { %560 = vst [vmem:[%s856_s3] sm:$0xff] %v556_v48  ;;  %v559_v54 = vadd.f32 %v551_v46, %v516_v53 }
 0x14d   :  { %562 = vst [vmem:[%s856_s3 + $0x10] sm:$0xff] %v558_v51  ;;  %561 = vst [vmem:[%s856_s3 + $0x8] sm:$0xff] %v557_v52 }
 0x14e   :  { %563 = vst [vmem:[%s856_s3 + $0x18] sm:$0xff] %v559_v54 }
 0x14f   :  { %568 = vsyncpa [#allocation4], 1 }

</bundles_post_ra>
